<compile_context>
chip_gen: v7x
topology: tpu7x:2x2x1
jax: 0.10.0
libtpu: 0.0.40
codegen_flags: <defaults>
</compile_context>

<pallas_src>
import functools

import jax
import jax.numpy as jnp
from jax.experimental import pallas as pl
from jax.experimental.pallas import tpu as pltpu

LANE = 128   # lane width / feature-dim padding quantum
SUB = 8      # sublane quantum (node / graph dims)
TILE = 256   # output-feature tile width for the pipelined conv weights


def _round_up(v, m):
    return (v + m - 1) // m * m


# ---------------------------------------------------------------------------
# Fused Pallas kernel
#   grid = (H1_pad // TILE,)  -- tiles of conv1's output features
#   step i:
#     i == 0      : ah0 = A_hat @ relu(x @ W_in + b_in)   (resident in VMEM, bf16)
#                   acc2 = 0
#     every step  : h1_tile = relu(ah0 @ W1[:, tile_i] + b1[tile_i])
#                   acc2   += h1_tile @ W2[tile_i, :]
#     i == last   : h2 = relu(A_hat @ acc2 + b2)
#                   out = (pool @ h2) @ W_out + b_out
# ---------------------------------------------------------------------------
def _fused_gcn_kernel(
    x_ref, adj_ref, pool_ref,
    w_in_ref, b_in_ref,
    w1_ref, b1_ref,
    w2_ref, b2_ref,
    w_out_ref, b_out_ref,
    out_ref,
    ah0_ref, acc2_ref,
):
    i = pl.program_id(0)

    @pl.when(i == 0)
    def _():
        # layer 0: Linear + ReLU (dropout is identity in eval mode)
        h0 = jnp.dot(x_ref[...], w_in_ref[...], preferred_element_type=jnp.float32)
        h0 = jnp.maximum(h0 + b_in_ref[...], 0.0).astype(jnp.bfloat16)
        # hoisted adjacency matmul:  (A @ H) @ W == A @ (H @ W)
        ah0_ref[...] = jnp.dot(
            adj_ref[...], h0, preferred_element_type=jnp.float32
        ).astype(ah0_ref.dtype)
        acc2_ref[...] = jnp.zeros_like(acc2_ref)

    # GCNConv 1, output-feature tile i
    h1_tile = jnp.maximum(
        jnp.dot(ah0_ref[...], w1_ref[...], preferred_element_type=jnp.float32)
        + b1_ref[...],
        0.0,
    )

    # GCNConv 2 contraction, accumulated over tiles: acc2 += h1[:, tile] @ W2[tile, :]
    acc2_ref[...] += jnp.dot(
        h1_tile.astype(jnp.bfloat16), w2_ref[...], preferred_element_type=jnp.float32
    )

    @pl.when(i == pl.num_programs(0) - 1)
    def _():
        h2 = jnp.maximum(
            jnp.dot(adj_ref[...], acc2_ref[...].astype(jnp.bfloat16),
                    preferred_element_type=jnp.float32)
            + b2_ref[...],
            0.0,
        ).astype(jnp.bfloat16)
        pooled = jnp.dot(
            pool_ref[...], h2, preferred_element_type=jnp.float32
        ).astype(jnp.bfloat16)
        out_ref[...] = (
            jnp.dot(pooled, w_out_ref[...], preferred_element_type=jnp.float32)
            + b_out_ref[...]
        )


# ---------------------------------------------------------------------------
# Glue (plain JAX): dense normalized adjacency, mean-pool matrix, params
# ---------------------------------------------------------------------------
def build_norm_adj(edge_index, num_nodes):
    """GCN symmetric normalization with self loops: D^{-1/2} (A + I) D^{-1/2}."""
    src = edge_index[0]
    dst = edge_index[1]
    a = jnp.zeros((num_nodes, num_nodes), jnp.float32)
    a = a.at[dst, src].add(1.0)
    a = a + jnp.eye(num_nodes, dtype=jnp.float32)
    deg = a.sum(axis=1)
    dinv = jnp.where(deg > 0, 1.0 / jnp.sqrt(deg), 0.0)
    return dinv[:, None] * a * dinv[None, :]


def build_mean_pool(batch, num_graphs):
    """[G, N] matrix P with P @ X == global_mean_pool(X, batch)."""
    onehot = (batch[None, :] == jnp.arange(num_graphs)[:, None]).astype(jnp.float32)
    counts = onehot.sum(axis=1, keepdims=True)
    return onehot / jnp.maximum(counts, 1.0)


def _linear_init(key, fan_in, fan_out):
    kw, kb = jax.random.split(key)
    bound = 1.0 / jnp.sqrt(jnp.float32(fan_in))
    w = jax.random.uniform(kw, (fan_in, fan_out), jnp.float32, -bound, bound)
    b = jax.random.uniform(kb, (1, fan_out), jnp.float32, -bound, bound)
    return w, b


def _glorot_init(key, fan_in, fan_out):
    limit = jnp.sqrt(6.0 / jnp.float32(fan_in + fan_out))
    w = jax.random.uniform(key, (fan_in, fan_out), jnp.float32, -limit, limit)
    return w, jnp.zeros((1, fan_out), jnp.float32)


def _pad2(a, rows, cols):
    return jnp.pad(a, ((0, rows - a.shape[0]), (0, cols - a.shape[1])))


def init_params(key, input_size, hidden_sizes, output_size):
    # architecture fixed by the spec (hidden_sizes of length 3 -> 2 GCNConv layers)
    assert len(hidden_sizes) == 3
    k0, k1, k2, k3 = jax.random.split(key, 4)
    h0, h1, h2 = hidden_sizes
    f_p = _round_up(input_size, LANE)
    h0_p = _round_up(h0, LANE)
    h1_p = _round_up(h1, TILE)      # conv1 output features padded to TILE multiple
    h2_p = _round_up(h2, LANE)
    o_p = _round_up(output_size, LANE)

    w_in, b_in = _linear_init(k0, input_size, h0)       # nn.Linear init
    w1, b1 = _glorot_init(k1, h0, h1)                    # GCNConv: glorot W, zero bias
    w2, b2 = _glorot_init(k2, h1, h2)
    w_out, b_out = _linear_init(k3, h2, output_size)

    # pad to lane-dense shapes; weights in bf16 (f32 accumulation in-kernel)
    w1_p = _pad2(w1, h0_p, h1_p).astype(jnp.bfloat16)
    nt = h1_p // TILE
    # pre-shard W1 -> [nt, H0p, TILE] so each grid step's DMA is contiguous
    w1_sh = jnp.transpose(w1_p.reshape(h0_p, nt, TILE), (1, 0, 2))

    return (
        (_pad2(w_in, f_p, h0_p).astype(jnp.bfloat16), _pad2(b_in, 1, h0_p)),
        (w1_sh, _pad2(b1, 1, h1_p)),
        (_pad2(w2, h1_p, h2_p).astype(jnp.bfloat16), _pad2(b2, 1, h2_p)),
        (_pad2(w_out, h2_p, o_p).astype(jnp.bfloat16), _pad2(b_out, 1, o_p)),
    )


@functools.partial(jax.jit, static_argnums=(4, 5))
def gcn_forward(params, x, edge_index, batch, num_graphs, true_output_size):
    (w_in, b_in), (w1_sh, b1), (w2, b2), (w_out, b_out) = params

    n = x.shape[0]
    n_pad = _round_up(max(n, SUB), SUB)
    g_pad = _round_up(max(num_graphs, SUB), SUB)
    f_pad = w_in.shape[0]

    adj = build_norm_adj(edge_index, n)
    adj = jnp.pad(adj, ((0, n_pad - n), (0, n_pad - n))).astype(jnp.bfloat16)
    pool = build_mean_pool(batch, num_graphs)
    pool = jnp.pad(pool, ((0, g_pad - num_graphs), (0, n_pad - n))).astype(jnp.bfloat16)
    x_pad = jnp.pad(x, ((0, n_pad - n), (0, f_pad - x.shape[1]))).astype(jnp.bfloat16)

    nt, h0_p, tile = w1_sh.shape
    h1_pad = nt * tile
    assert w2.shape[0] == h1_pad and b1.shape[1] == h1_pad

    def fixed(shape):
        return pl.BlockSpec(shape, lambda i: (0,) * len(shape))

    out_pad = pl.pallas_call(
        _fused_gcn_kernel,
        out_shape=jax.ShapeDtypeStruct((g_pad, w_out.shape[1]), jnp.float32),
        grid=(nt,),
        in_specs=[
            fixed(x_pad.shape),                                   # x      [Np, Fp]
            fixed(adj.shape),                                     # A_hat  [Np, Np]
            fixed(pool.shape),                                    # pool   [Gp, Np]
            fixed(w_in.shape),                                    # W_in   [Fp, H0p]
            fixed(b_in.shape),                                    # b_in   [1, H0p]
            pl.BlockSpec((None, h0_p, tile), lambda i: (i, 0, 0)),  # W1 tile (contig)
            pl.BlockSpec((1, tile), lambda i: (0, i)),            # b1 tile
            pl.BlockSpec((tile, w2.shape[1]), lambda i: (i, 0)),  # W2 row tile (contig)
            fixed(b2.shape),                                      # b2     [1, H2p]
            fixed(w_out.shape),                                   # W_out  [H2p, Op]
            fixed(b_out.shape),                                   # b_out  [1, Op]
        ],
        out_specs=pl.BlockSpec((g_pad, w_out.shape[1]), lambda i: (0, 0)),
        scratch_shapes=[
            pltpu.VMEM((n_pad, h0_p), jnp.bfloat16),        # ah0 resident across steps
            pltpu.VMEM((n_pad, w2.shape[1]), jnp.float32),  # conv2 f32 accumulator
        ],
        compiler_params=pltpu.CompilerParams(
            # tile axis carries layer dependencies (ah0 init, acc2 accumulation)
            dimension_semantics=("arbitrary",),
        ),
        cost_estimate=pl.CostEstimate(
            flops=55_000_000, transcendentals=0, bytes_accessed=3_700_000
        ),
    )(x_pad, adj, pool, w_in, b_in, w1_sh, b1, w2, b2, w_out, b_out)

    return out_pad[:num_graphs, :true_output_size]


# Pure-JAX reference (same bf16 cast points, f32 accumulation) for validation.
def reference_forward(params, x, edge_index, batch, num_graphs, true_output_size):
    (w_in, b_in), (w1_sh, b1), (w2, b2), (w_out, b_out) = params
    nt, h0_p, tile = w1_sh.shape
    w1 = jnp.transpose(w1_sh, (1, 0, 2)).reshape(h0_p, nt * tile)

    n = x.shape[0]
    adj = build_norm_adj(edge_index, n).astype(jnp.bfloat16)
    pool = build_mean_pool(batch, num_graphs).astype(jnp.bfloat16)
    xp = jnp.pad(x, ((0, 0), (0, w_in.shape[0] - x.shape[1]))).astype(jnp.bfloat16)

    h0 = jnp.maximum(
        jnp.dot(xp, w_in, preferred_element_type=jnp.float32) + b_in, 0.0
    ).astype(jnp.bfloat16)
    ah0 = jnp.dot(adj, h0, preferred_element_type=jnp.float32).astype(jnp.bfloat16)
    h1 = jnp.maximum(
        jnp.dot(ah0, w1, preferred_element_type=jnp.float32) + b1, 0.0
    ).astype(jnp.bfloat16)
    xw2 = jnp.dot(h1, w2, preferred_element_type=jnp.float32).astype(jnp.bfloat16)
    h2 = jnp.maximum(
        jnp.dot(adj, xw2, preferred_element_type=jnp.float32) + b2, 0.0
    ).astype(jnp.bfloat16)
    pooled = jnp.dot(pool, h2, preferred_element_type=jnp.float32).astype(jnp.bfloat16)
    out = jnp.dot(pooled, w_out, preferred_element_type=jnp.float32) + b_out
    return out[:, :true_output_size]


# ---------------------------------------------------------------------------
# Main
# ---------------------------------------------------------------------------
if __name__ == "__main__":
    input_size = 26
    hidden_sizes = [812, 812, 500]
    output_size = 455

    num_graphs = 2
    nodes_per_graph = 8
    num_nodes = num_graphs * nodes_per_graph  # 16

    key = jax.random.PRNGKey(0)
    kx, kp = jax.random.split(key)

    # node features [N, input_size]
    x = jax.random.normal(kx, (num_nodes, input_size), jnp.float32)

    # ring graph within each of the 2 graphs, edges in both directions
    srcs, dsts = [], []
    for g in range(num_graphs):
        base = g * nodes_per_graph
        for i in range(nodes_per_graph):
            a = base + i
            nb = base + (i + 1) % nodes_per_graph
            srcs += [a, nb]
            dsts += [nb, a]
    edge_index = jnp.array([srcs, dsts], dtype=jnp.int32)  # [2, 32]

    batch = jnp.repeat(jnp.arange(num_graphs, dtype=jnp.int32), nodes_per_graph)

    params = init_params(kp, input_size, hidden_sizes, output_size)

    out = gcn_forward(params, x, edge_index, batch, num_graphs, output_size)
    out = jax.block_until_ready(out)

    assert out.shape == (num_graphs, output_size), out.shape
    assert bool(jnp.all(jnp.isfinite(out)))

    ref = reference_forward(params, x, edge_index, batch, num_graphs, output_size)
    assert bool(jnp.allclose(out, ref, rtol=1e-2, atol=1e-2)), float(
        jnp.max(jnp.abs(out - ref))
    )

    print("KERNEL_OK")
</pallas_src>

<mosaic_0001>
module attributes {stable_mosaic.version = 11 : i64} {
  func.func private @main(%arg0: i32) attributes {dimension_semantics = [#tpu.dimension_semantics<core_parallel>], iteration_bounds = array<i64: 2>, tpu.core_type = #tpu.core_type<sc_scalar_subcore>, window_params = []} {
    return
  }
}

module attributes {stable_mosaic.version = 11 : i64} {
  func.func private @main(%arg0: i32) attributes {dimension_semantics = [#tpu.dimension_semantics<core_parallel>], iteration_bounds = array<i64: 2>, tpu.core_type = #tpu.core_type<sc_scalar_subcore>, window_params = []} {
    return
  }
}

module attributes {stable_mosaic.version = 11 : i64} {
  func.func @_fused_gcn_kernel(%arg0: i32, %arg1: memref<16x128xbf16, #tpu.memory_space<vmem>>, %arg2: memref<16x16xbf16, #tpu.memory_space<vmem>>, %arg3: memref<8x16xbf16, #tpu.memory_space<vmem>>, %arg4: memref<128x896xbf16, #tpu.memory_space<vmem>>, %arg5: memref<1x896xf32, #tpu.memory_space<vmem>>, %arg6: memref<1x896x256xbf16, #tpu.memory_space<vmem>>, %arg7: memref<1x256xf32, #tpu.memory_space<vmem>>, %arg8: memref<256x512xbf16, #tpu.memory_space<vmem>>, %arg9: memref<1x512xf32, #tpu.memory_space<vmem>>, %arg10: memref<512x512xbf16, #tpu.memory_space<vmem>>, %arg11: memref<1x512xf32, #tpu.memory_space<vmem>>, %arg12: memref<8x512xf32, #tpu.memory_space<vmem>>, %arg13: memref<16x896xbf16, #tpu.memory_space<vmem>>, %arg14: memref<16x512xf32, #tpu.memory_space<vmem>>) attributes {dimension_semantics = [#tpu.dimension_semantics<arbitrary>], iteration_bounds = array<i64: 4>, scalar_prefetch = 0 : i64, scratch_operands = 2 : i64, tpu.core_type = #tpu.core_type<tc>, window_params = [{pipeline_mode = #tpu.pipeline_mode<synchronous>, transform_indices = @transform_0, window_bounds = array<i64: 16, 128>}, {pipeline_mode = #tpu.pipeline_mode<synchronous>, transform_indices = @transform_1, window_bounds = array<i64: 16, 16>}, {pipeline_mode = #tpu.pipeline_mode<synchronous>, transform_indices = @transform_2, window_bounds = array<i64: 8, 16>}, {pipeline_mode = #tpu.pipeline_mode<synchronous>, transform_indices = @transform_3, window_bounds = array<i64: 128, 896>}, {pipeline_mode = #tpu.pipeline_mode<synchronous>, transform_indices = @transform_4, window_bounds = array<i64: 1, 896>}, {transform_indices = @transform_5, window_bounds = array<i64: 1, 896, 256>}, {transform_indices = @transform_6, window_bounds = array<i64: 1, 256>}, {transform_indices = @transform_7, window_bounds = array<i64: 256, 512>}, {pipeline_mode = #tpu.pipeline_mode<synchronous>, transform_indices = @transform_8, window_bounds = array<i64: 1, 512>}, {pipeline_mode = #tpu.pipeline_mode<synchronous>, transform_indices = @transform_9, window_bounds = array<i64: 512, 512>}, {pipeline_mode = #tpu.pipeline_mode<synchronous>, transform_indices = @transform_10, window_bounds = array<i64: 1, 512>}, {pipeline_mode = #tpu.pipeline_mode<synchronous>, transform_indices = @transform_11, window_bounds = array<i64: 8, 512>}]} {
    %c0_i32 = arith.constant 0 : i32
    %0 = arith.cmpi eq, %arg0, %c0_i32 : i32
    %1 = arith.extui %0 : i1 to i32
    %c0_i32_0 = arith.constant 0 : i32
    %2 = arith.cmpi ne, %1, %c0_i32_0 : i32
    scf.if %2 {
      %c0_16 = arith.constant 0 : index
      %c0_17 = arith.constant 0 : index
      %21 = vector.load %arg1[%c0_16, %c0_17] : memref<16x128xbf16, #tpu.memory_space<vmem>>, vector<16x128xbf16>
      %c0_18 = arith.constant 0 : index
      %c0_19 = arith.constant 0 : index
      %22 = vector.load %arg4[%c0_18, %c0_19] : memref<128x896xbf16, #tpu.memory_space<vmem>>, vector<128x896xbf16>
      %cst_20 = arith.constant dense<0.000000e+00> : vector<16x896xf32>
      %23 = tpu.matmul %21, %22, %cst_20 {dimension_numbers = #tpu.dot_dimension_numbers<[1], [0], [0], [1], [0, 0, 1, 1], [], []>} : vector<16x128xbf16>, vector<128x896xbf16>, vector<16x896xf32> -> vector<16x896xf32>
      %c0_21 = arith.constant 0 : index
      %c0_22 = arith.constant 0 : index
      %24 = vector.load %arg5[%c0_21, %c0_22] : memref<1x896xf32, #tpu.memory_space<vmem>>, vector<1x896xf32>
      %25 = vector.broadcast %24 : vector<1x896xf32> to vector<16x896xf32>
      %26 = arith.addf %23, %25 : vector<16x896xf32>
      %cst_23 = arith.constant 0.000000e+00 : f32
      %27 = vector.broadcast %cst_23 : f32 to vector<16x896xf32>
      %28 = arith.maximumf %26, %27 : vector<16x896xf32>
      %29 = arith.truncf %28 : vector<16x896xf32> to vector<16x896xbf16>
      %c0_24 = arith.constant 0 : index
      %c0_25 = arith.constant 0 : index
      %30 = vector.load %arg2[%c0_24, %c0_25] : memref<16x16xbf16, #tpu.memory_space<vmem>>, vector<16x16xbf16>
      %cst_26 = arith.constant dense<0.000000e+00> : vector<16x896xf32>
      %31 = tpu.matmul %30, %29, %cst_26 {dimension_numbers = #tpu.dot_dimension_numbers<[1], [0], [0], [1], [0, 0, 1, 1], [], []>} : vector<16x16xbf16>, vector<16x896xbf16>, vector<16x896xf32> -> vector<16x896xf32>
      %32 = arith.truncf %31 : vector<16x896xf32> to vector<16x896xbf16>
      %c0_27 = arith.constant 0 : index
      %c0_28 = arith.constant 0 : index
      %33 = vector.load %arg13[%c0_27, %c0_28] : memref<16x896xbf16, #tpu.memory_space<vmem>>, vector<16x896xbf16>
      tpu.vector_store %arg13[%c0_27, %c0_28], %32 {strides = array<i32>} : memref<16x896xbf16, #tpu.memory_space<vmem>>, vector<16x896xbf16>,
      %cst_29 = arith.constant 0.000000e+00 : f32
      %34 = vector.broadcast %cst_29 : f32 to vector<16x512xf32>
      %c0_30 = arith.constant 0 : index
      %c0_31 = arith.constant 0 : index
      %35 = vector.load %arg14[%c0_30, %c0_31] : memref<16x512xf32, #tpu.memory_space<vmem>>, vector<16x512xf32>
      tpu.vector_store %arg14[%c0_30, %c0_31], %34 {strides = array<i32>} : memref<16x512xf32, #tpu.memory_space<vmem>>, vector<16x512xf32>,
    } else {
    }
    %c0 = arith.constant 0 : index
    %c0_1 = arith.constant 0 : index
    %3 = vector.load %arg13[%c0, %c0_1] : memref<16x896xbf16, #tpu.memory_space<vmem>>, vector<16x896xbf16>
    %c0_2 = arith.constant 0 : index
    %c0_3 = arith.constant 0 : index
    %c0_4 = arith.constant 0 : index
    %4 = vector.load %arg6[%c0_2, %c0_3, %c0_4] : memref<1x896x256xbf16, #tpu.memory_space<vmem>>, vector<1x896x256xbf16>
    %5 = vector.shape_cast %4 : vector<1x896x256xbf16> to vector<896x256xbf16>
    %cst = arith.constant dense<0.000000e+00> : vector<16x256xf32>
    %6 = tpu.matmul %3, %5, %cst {dimension_numbers = #tpu.dot_dimension_numbers<[1], [0], [0], [1], [0, 0, 1, 1], [], []>} : vector<16x896xbf16>, vector<896x256xbf16>, vector<16x256xf32> -> vector<16x256xf32>
    %c0_5 = arith.constant 0 : index
    %c0_6 = arith.constant 0 : index
    %7 = vector.load %arg7[%c0_5, %c0_6] : memref<1x256xf32, #tpu.memory_space<vmem>>, vector<1x256xf32>
    %8 = vector.broadcast %7 : vector<1x256xf32> to vector<16x256xf32>
    %9 = arith.addf %6, %8 : vector<16x256xf32>
    %cst_7 = arith.constant 0.000000e+00 : f32
    %10 = vector.broadcast %cst_7 : f32 to vector<16x256xf32>
    %11 = arith.maximumf %9, %10 : vector<16x256xf32>
    %c0_8 = arith.constant 0 : index
    %c0_9 = arith.constant 0 : index
    %12 = vector.load %arg14[%c0_8, %c0_9] : memref<16x512xf32, #tpu.memory_space<vmem>>, vector<16x512xf32>
    %13 = arith.truncf %11 : vector<16x256xf32> to vector<16x256xbf16>
    %c0_10 = arith.constant 0 : index
    %c0_11 = arith.constant 0 : index
    %14 = vector.load %arg8[%c0_10, %c0_11] : memref<256x512xbf16, #tpu.memory_space<vmem>>, vector<256x512xbf16>
    %cst_12 = arith.constant dense<0.000000e+00> : vector<16x512xf32>
    %15 = tpu.matmul %13, %14, %cst_12 {dimension_numbers = #tpu.dot_dimension_numbers<[1], [0], [0], [1], [0, 0, 1, 1], [], []>} : vector<16x256xbf16>, vector<256x512xbf16>, vector<16x512xf32> -> vector<16x512xf32>
    %16 = arith.addf %12, %15 : vector<16x512xf32>
    %c0_13 = arith.constant 0 : index
    %c0_14 = arith.constant 0 : index
    %17 = vector.load %arg14[%c0_13, %c0_14] : memref<16x512xf32, #tpu.memory_space<vmem>>, vector<16x512xf32>
    tpu.vector_store %arg14[%c0_13, %c0_14], %16 {strides = array<i32>} : memref<16x512xf32, #tpu.memory_space<vmem>>, vector<16x512xf32>,
    %c3_i32 = arith.constant 3 : i32
    %18 = arith.cmpi eq, %arg0, %c3_i32 : i32
    %19 = arith.extui %18 : i1 to i32
    %c0_i32_15 = arith.constant 0 : i32
    %20 = arith.cmpi ne, %19, %c0_i32_15 : i32
    scf.if %20 {
      %c0_16 = arith.constant 0 : index
      %c0_17 = arith.constant 0 : index
      %21 = vector.load %arg2[%c0_16, %c0_17] : memref<16x16xbf16, #tpu.memory_space<vmem>>, vector<16x16xbf16>
      %c0_18 = arith.constant 0 : index
      %c0_19 = arith.constant 0 : index
      %22 = vector.load %arg14[%c0_18, %c0_19] : memref<16x512xf32, #tpu.memory_space<vmem>>, vector<16x512xf32>
      %23 = arith.truncf %22 : vector<16x512xf32> to vector<16x512xbf16>
      %cst_20 = arith.constant dense<0.000000e+00> : vector<16x512xf32>
      %24 = tpu.matmul %21, %23, %cst_20 {dimension_numbers = #tpu.dot_dimension_numbers<[1], [0], [0], [1], [0, 0, 1, 1], [], []>} : vector<16x16xbf16>, vector<16x512xbf16>, vector<16x512xf32> -> vector<16x512xf32>
      %c0_21 = arith.constant 0 : index
      %c0_22 = arith.constant 0 : index
      %25 = vector.load %arg9[%c0_21, %c0_22] : memref<1x512xf32, #tpu.memory_space<vmem>>, vector<1x512xf32>
      %26 = vector.broadcast %25 : vector<1x512xf32> to vector<16x512xf32>
      %27 = arith.addf %24, %26 : vector<16x512xf32>
      %cst_23 = arith.constant 0.000000e+00 : f32
      %28 = vector.broadcast %cst_23 : f32 to vector<16x512xf32>
      %29 = arith.maximumf %27, %28 : vector<16x512xf32>
      %30 = arith.truncf %29 : vector<16x512xf32> to vector<16x512xbf16>
      %c0_24 = arith.constant 0 : index
      %c0_25 = arith.constant 0 : index
      %31 = vector.load %arg3[%c0_24, %c0_25] : memref<8x16xbf16, #tpu.memory_space<vmem>>, vector<8x16xbf16>
      %cst_26 = arith.constant dense<0.000000e+00> : vector<8x512xf32>
      %32 = tpu.matmul %31, %30, %cst_26 {dimension_numbers = #tpu.dot_dimension_numbers<[1], [0], [0], [1], [0, 0, 1, 1], [], []>} : vector<8x16xbf16>, vector<16x512xbf16>, vector<8x512xf32> -> vector<8x512xf32>
      %33 = arith.truncf %32 : vector<8x512xf32> to vector<8x512xbf16>
      %c0_27 = arith.constant 0 : index
      %c0_28 = arith.constant 0 : index
      %34 = vector.load %arg10[%c0_27, %c0_28] : memref<512x512xbf16, #tpu.memory_space<vmem>>, vector<512x512xbf16>
      %cst_29 = arith.constant dense<0.000000e+00> : vector<8x512xf32>
      %35 = tpu.matmul %33, %34, %cst_29 {dimension_numbers = #tpu.dot_dimension_numbers<[1], [0], [0], [1], [0, 0, 1, 1], [], []>} : vector<8x512xbf16>, vector<512x512xbf16>, vector<8x512xf32> -> vector<8x512xf32>
      %c0_30 = arith.constant 0 : index
      %c0_31 = arith.constant 0 : index
      %36 = vector.load %arg11[%c0_30, %c0_31] : memref<1x512xf32, #tpu.memory_space<vmem>>, vector<1x512xf32>
      %37 = vector.broadcast %36 : vector<1x512xf32> to vector<8x512xf32>
      %38 = arith.addf %35, %37 : vector<8x512xf32>
      %c0_32 = arith.constant 0 : index
      %c0_33 = arith.constant 0 : index
      %39 = vector.load %arg12[%c0_32, %c0_33] : memref<8x512xf32, #tpu.memory_space<vmem>>, vector<8x512xf32>
      tpu.vector_store %arg12[%c0_32, %c0_33], %38 {strides = array<i32>} : memref<8x512xf32, #tpu.memory_space<vmem>>, vector<8x512xf32>,
    } else {
    }
    return
  }
  func.func @transform_0(%arg0: i32) -> (i32, i32) {
    %c0_i32 = arith.constant 0 : i32
    %c0_i32_0 = arith.constant 0 : i32
    %c0_i32_1 = arith.constant 0 : i32
    return %c0_i32, %c0_i32_0 : i32, i32
  }
  func.func @transform_1(%arg0: i32) -> (i32, i32) {
    %c0_i32 = arith.constant 0 : i32
    %c0_i32_0 = arith.constant 0 : i32
    %c0_i32_1 = arith.constant 0 : i32
    return %c0_i32, %c0_i32_0 : i32, i32
  }
  func.func @transform_2(%arg0: i32) -> (i32, i32) {
    %c0_i32 = arith.constant 0 : i32
    %c0_i32_0 = arith.constant 0 : i32
    %c0_i32_1 = arith.constant 0 : i32
    return %c0_i32, %c0_i32_0 : i32, i32
  }
  func.func @transform_3(%arg0: i32) -> (i32, i32) {
    %c0_i32 = arith.constant 0 : i32
    %c0_i32_0 = arith.constant 0 : i32
    %c0_i32_1 = arith.constant 0 : i32
    return %c0_i32, %c0_i32_0 : i32, i32
  }
  func.func @transform_4(%arg0: i32) -> (i32, i32) {
    %c0_i32 = arith.constant 0 : i32
    %c0_i32_0 = arith.constant 0 : i32
    %c0_i32_1 = arith.constant 0 : i32
    return %c0_i32, %c0_i32_0 : i32, i32
  }
  func.func @transform_5(%arg0: i32) -> (i32, i32, i32) {
    %c0_i32 = arith.constant 0 : i32
    %c0_i32_0 = arith.constant 0 : i32
    %c0_i32_1 = arith.constant 0 : i32
    return %arg0, %c0_i32, %c0_i32_0 : i32, i32, i32
  }
  func.func @transform_6(%arg0: i32) -> (i32, i32) {
    %c0_i32 = arith.constant 0 : i32
    %c0_i32_0 = arith.constant 0 : i32
    return %c0_i32, %arg0 : i32, i32
  }
  func.func @transform_7(%arg0: i32) -> (i32, i32) {
    %c0_i32 = arith.constant 0 : i32
    %c0_i32_0 = arith.constant 0 : i32
    return %arg0, %c0_i32 : i32, i32
  }
  func.func @transform_8(%arg0: i32) -> (i32, i32) {
    %c0_i32 = arith.constant 0 : i32
    %c0_i32_0 = arith.constant 0 : i32
    %c0_i32_1 = arith.constant 0 : i32
    return %c0_i32, %c0_i32_0 : i32, i32
  }
  func.func @transform_9(%arg0: i32) -> (i32, i32) {
    %c0_i32 = arith.constant 0 : i32
    %c0_i32_0 = arith.constant 0 : i32
    %c0_i32_1 = arith.constant 0 : i32
    return %c0_i32, %c0_i32_0 : i32, i32
  }
  func.func @transform_10(%arg0: i32) -> (i32, i32) {
    %c0_i32 = arith.constant 0 : i32
    %c0_i32_0 = arith.constant 0 : i32
    %c0_i32_1 = arith.constant 0 : i32
    return %c0_i32, %c0_i32_0 : i32, i32
  }
  func.func @transform_11(%arg0: i32) -> (i32, i32) {
    %c0_i32 = arith.constant 0 : i32
    %c0_i32_0 = arith.constant 0 : i32
    %c0_i32_1 = arith.constant 0 : i32
    return %c0_i32, %c0_i32_0 : i32, i32
  }
}

</mosaic_0001>

<bundles_post_ra>
// kernel: gcn_forward.1
= control target key start
LH: loop header
LB: loop body
LE: loop exit
PB: predicated region body
PF: predicated region fallthrough
CT: control target
= control target key end

     0   :  { %16 = vsyncpa [#allocation5], 0  ;;  %s4972_s17 = smov 0   ;;  %s5499_s0 = inlined_call_operand.vmem [shape: bf16[16,128], index: 0, kind: input, shape index: {}]   ;;  %s5500_s1 = inlined_call_operand.vmem [shape: bf16[16,16], index: 1, kind: input, shape index: {}]   ;;  %s5501_s2 = inlined_call_operand.vmem [shape: bf16[8,16], index: 2, kind: input, shape index: {}]   ;;  %s5502_s3 = inlined_call_operand.vmem [shape: bf16[128,896], index: 3, kind: input, shape index: {}]   ;;  %s5503_s4 = inlined_call_operand.vmem [shape: f32[1,896], index: 4, kind: input, shape index: {}]   ;;  %s5504_s5 = inlined_call_operand.vmem [shape: bf16[4,896,256], index: 5, kind: input, shape index: {}]   ;;  %s5505_s6 = inlined_call_operand.vmem [shape: f32[1,1024], index: 6, kind: input, shape index: {}]   ;;  %s5506_s7 = inlined_call_operand.vmem [shape: bf16[1024,512], index: 7, kind: input, shape index: {}]   ;;  %s5507_s8 = inlined_call_operand.vmem [shape: f32[1,512], index: 8, kind: input, shape index: {}]   ;;  %s5508_s9 = inlined_call_operand.hbm [shape: bf16[512,512], index: 9, kind: input, shape index: {}]   ;;  %s5509_s10 = inlined_call_operand.vmem [shape: f32[1,512], index: 10, kind: input, shape index: {}]   ;;  %s5510_s11 = inlined_call_operand.vmem [shape: f32[8,512], index: 11, kind: output, shape index: {}]  }
   0x1 LB: > { %s4978_s18 = sadd.s32 4294967295, %s4902_s17   ;;  %p3847_p0 = scmp.ge.s32.totalorder %s4902_s17, 1  ;;  %s4902_s17 = sphi %s4972_s17, %s22_s17  }
   0x2   : > { %p294_p1 = scmp.lt.s32.totalorder %s4902_s17, 5  ;;  %s4904_s19 = smov [#allocation4]  }
   0x3   : > { %s324_s20 = sshll.u32 %s4904_s19, 4  ;;  %p5511_p4 = scmp.eq.s32.totalorder %s4978_s18, 0  ;;  %s325_s20 = int_to_ptr.vmem [resolvable:$true] %s324_s20 }
   0x4   : > { %p4983_p3 = pnand %p3847_p0, %p294_p1  ;;  %s4864_s25 = scalar_lea.hbm %s5508_s9, 16384 }
   0x5   : > { %p4865_p7 = scmp.ne.s32.totalorder %s5508_s9, %s4864_s25  ;;  %p4871_p11 = scmp.lt.u32.totalorder %s4864_s25, %s5508_s9 }
   0x6   : > { %s5513_s21 = scalar_select %p4983_p3, 1, 0 }
   0x7   : > { %p4303_p5 = pneg %p4983_p3 }
   0x9   : > { %p4992_p6 = pnand %p5511_p4, %p4303_p5 }
   0xb   : > { %p4866_p8 = pneg %p4992_p6 }
   0xd   : > { %p4867_p9 = pnand %p4866_p8, %p4865_p7 }
   0xf   : > { %p4868_p10 = pneg %p4867_p9 }
  0x11   : > { %p4873_p12 = pnand %p4871_p11, %p4868_p10 }
  0x13   : > { %4876 = shalt.err (!%p4873_p12)
}
  0x14   : > { %s4877_s30 = scalar_lea.vmem %s325_s20, 16384  ;;  %p4885_p5 = scmp.lt.s32.totalorder %s325_s20, %s325_s20 }
  0x15   : > { %p4878_p13 = scmp.ne.s32.totalorder %s325_s20, %s4877_s30  ;;  %p4886_p2 = scmp.lt.s32.totalorder %s4877_s30, %s4877_s30 }
  0x17   : > { %p4880_p0 = pnand %p4878_p13, %p4866_p8  ;;  %p4887_p4 = por %p4886_p2, %p4885_p5 }
  0x19   : > { %p4881_p1 = pneg %p4880_p0 }
  0x1b   : > { %p4888_p3 = pnand %p4887_p4, %p4881_p1 }
  0x1d   : > { %4891 = shalt.err (!%p4888_p3)
}
  0x1e   : > { %s4905_s12 = smov 256   ;;  %s4906_s13 = smov 16  }
  0x1f   : > { %4306 = dma.hbm_to_vmem [thread:$0]  (!%p4992_p6), %s5508_s9, 16384, %s325_s20, [#allocation5], %s4905_s12, %s4905_s12, %s4906_s13  }
  0x20   : > { %p5515_p7 = scmp.ne.s32.totalorder %s5513_s21, 0 }
  0x21   : > { %p5516_p9 = scmp.eq.s32.totalorder (!%p5515_p7), %s4978_s18, 0 }
  0x22   : > { %369 = sbr.rel (%p5515_p7) target bundleno = 1896 (0x768), region = 64 }
  0x29   : > { %4897 = dma.done.wait (%p5516_p9), [#allocation5], 16384   ;;  %p5517_p8 = pmov %p5516_p9 }
  0x2a   : > { %p414_p2 = scmp.lt.s32.totalorder %s4978_s18, 3  ;;  %s3853_s16 = sshll.u32 %s4978_s18, 1 }
  0x2b   : > { %4899 = vsyncadd (%p5517_p8), [#allocation5], 4294950912  ;;  %p420_p3 = scmp.lt.s32.totalorder %s3853_s16, 7  ;;  %s3854_s19 = sshll.u32 %s4978_s18, 5 }
  0x2c   : > { %s415_s22 = scalar_select %p414_p2, %s4978_s18, 3 }
  0x2d   : > { %s5520_s16 = smov (!%p420_p3, %s3853_s16), 7  ;;  %p425_p4 = scmp.lt.s32.totalorder %s3854_s19, 127 }
  0x2e   : > { %s4298_s20 = smul.u32 896, %s415_s22  ;;  %s422_s24 = scalar_lea.vmem %s5505_s6, %s5520_s16 }
  0x2f   : > { %s5522_s19 = smov (!%p425_p4, %s3854_s19), 127  ;;  %p5518_p6 = scmp.ne.s32.totalorder %s4978_s18, 0 }
  0x30   : > { %s5031_s27 = scalar_lea.vmem %s5504_s5, %s4298_s20  ;;  %s4232_s28 = sshll.u32 %s5522_s19, 4  ;;  %v4325_v0 = vld [vmem:[%s5502_s3 + $0x4] ss:$28 sps:$4 sm:$0xff] (!%p5518_p6)   ;;  %v4327_v1 = vld [vmem:[%s5502_s3 + $0xc] ss:$28 sps:$4 sm:$0xff] (!%p5518_p6)   ;;  %v4907_v2 = vmov (!%p5518_p6), 0   ;;  %v504_v59 = vlaneseq (!%p5518_p6) }
  0x31   : > { %s5036_s12 = scalar_lea.vmem %s5506_s7, %s4232_s28  ;;  %435 = sbr.rel (%p5518_p6) target bundleno = 557 (0x22d), region = 72  ;;  %865 = vmatprep.mubr.bf16.mxu0 (!%p5518_p6), %v4907_v2  ;;  %908 = vmatprep.mubr.bf16.mxu1 (!%p5518_p6), %v4907_v2  ;;  %v4908_v3 = vmov (!%p5518_p6), 0.0   ;;  %v4329_v4 = vld [vmem:[%s5502_s3] ss:$28 sps:$4 sm:$0xff] (!%p5518_p6)   ;;  %v4330_v5 = vld [vmem:[%s5502_s3 + $0x8] ss:$28 sps:$4 sm:$0xff] (!%p5518_p6)  }
  0x32   : > { %1219 = vst [vmem:[#allocation3] sm:$0xff] (!%p5518_p6), %v4908_v3  ;;  %1220 = vst [vmem:[#allocation3 + $0x8] sm:$0xff] (!%p5518_p6), %v4908_v3  ;;  %833 = vmatprep.subr.bf16.mxu0 (!%p5518_p6), %v4325_v0  ;;  %876 = vmatprep.subr.bf16.mxu1 (!%p5518_p6), %v4327_v1  ;;  %v4331_v6 = vld [vmem:[%s5502_s3 + $0x3c] ss:$28 sps:$4 sm:$0xff] (!%p5518_p6)   ;;  %v4333_v7 = vld [vmem:[%s5502_s3 + $0x44] ss:$28 sps:$4 sm:$0xff] (!%p5518_p6)  }
  0x33   : > { %1221 = vst [vmem:[#allocation3 + $0x10] sm:$0xff] (!%p5518_p6), %v4908_v3  ;;  %1222 = vst [vmem:[#allocation3 + $0x18] sm:$0xff] (!%p5518_p6), %v4908_v3  ;;  %834 = vmatpush1.bf16.msra.mxu0 (!%p5518_p6), %v4329_v4  ;;  %877 = vmatpush1.bf16.msra.mxu1 (!%p5518_p6), %v4330_v5  ;;  %v4335_v8 = vld [vmem:[%s5502_s3 + $0x38] ss:$28 sps:$4 sm:$0xff] (!%p5518_p6)   ;;  %v4336_v9 = vld [vmem:[%s5502_s3 + $0x40] ss:$28 sps:$4 sm:$0xff] (!%p5518_p6)  }
  0x34   : > { %1223 = vst [vmem:[#allocation3 + $0x20] sm:$0xff] (!%p5518_p6), %v4908_v3  ;;  %1224 = vst [vmem:[#allocation3 + $0x28] sm:$0xff] (!%p5518_p6), %v4908_v3  ;;  %835 = vmatprep.subr.bf16.mxu0 (!%p5518_p6), %v4331_v6  ;;  %878 = vmatprep.subr.bf16.mxu1 (!%p5518_p6), %v4333_v7  ;;  %v4337_v10 = vld [vmem:[%s5502_s3 + $0x74] ss:$28 sps:$4 sm:$0xff] (!%p5518_p6)   ;;  %v4339_v11 = vld [vmem:[%s5502_s3 + $0x7c] ss:$28 sps:$4 sm:$0xff] (!%p5518_p6)  }
  0x35   : > { %1225 = vst [vmem:[#allocation3 + $0x30] sm:$0xff] (!%p5518_p6), %v4908_v3  ;;  %1226 = vst [vmem:[#allocation3 + $0x38] sm:$0xff] (!%p5518_p6), %v4908_v3  ;;  %v4341_v12 = vld [vmem:[%s5502_s3 + $0x70] ss:$28 sps:$4 sm:$0xff] (!%p5518_p6)   ;;  %v4342_v13 = vld [vmem:[%s5502_s3 + $0x78] ss:$28 sps:$4 sm:$0xff] (!%p5518_p6)  }
  0x36   : > { %v4343_v14 = vld [vmem:[%s5502_s3 + $0xac] ss:$28 sps:$4 sm:$0xff] (!%p5518_p6)   ;;  %v4345_v15 = vld [vmem:[%s5502_s3 + $0xb4] ss:$28 sps:$4 sm:$0xff] (!%p5518_p6)   ;;  %v4349_v18 = vld [vmem:[%s5502_s3 + $0xe4] ss:$28 sps:$4 sm:$0xff] (!%p5518_p6)  }
  0x37   : > { %836 = vmatpush1.bf16.msra.mxu0 (!%p5518_p6), %v4335_v8  ;;  %879 = vmatpush1.bf16.msra.mxu1 (!%p5518_p6), %v4336_v9  ;;  %v4347_v16 = vld [vmem:[%s5502_s3 + $0xa8] ss:$28 sps:$4 sm:$0xff] (!%p5518_p6)   ;;  %v4348_v17 = vld [vmem:[%s5502_s3 + $0xb0] ss:$28 sps:$4 sm:$0xff] (!%p5518_p6)   ;;  %v4353_v20 = vld [vmem:[%s5502_s3 + $0xe0] ss:$28 sps:$4 sm:$0xff] (!%p5518_p6)  }
  0x38   : > { %837 = vmatprep.subr.bf16.mxu0 %v4337_v10  ;;  %880 = vmatprep.subr.bf16.mxu1 %v4339_v11  ;;  %v4351_v19 = vld [vmem:[%s5502_s3 + $0xec] ss:$28 sps:$4 sm:$0xff]   ;;  %v4355_v22 = vld [vmem:[%s5502_s3 + $0x11c] ss:$28 sps:$4 sm:$0xff]   ;;  %v4357_v23 = vld [vmem:[%s5502_s3 + $0x124] ss:$28 sps:$4 sm:$0xff]  }
  0x39   : > { %v4354_v21 = vld [vmem:[%s5502_s3 + $0xe8] ss:$28 sps:$4 sm:$0xff]   ;;  %v4359_v24 = vld [vmem:[%s5502_s3 + $0x118] ss:$28 sps:$4 sm:$0xff]   ;;  %v4360_v25 = vld [vmem:[%s5502_s3 + $0x120] ss:$28 sps:$4 sm:$0xff]  }
  0x3a   : > { %v4361_v26 = vld [vmem:[%s5502_s3 + $0x154] ss:$28 sps:$4 sm:$0xff]   ;;  %v4363_v27 = vld [vmem:[%s5502_s3 + $0x15c] ss:$28 sps:$4 sm:$0xff]   ;;  %v4367_v30 = vld [vmem:[%s5502_s3 + $0x18c] ss:$28 sps:$4 sm:$0xff]  }
  0x3b   : > { %838 = vmatpush1.bf16.msra.mxu0 %v4341_v12  ;;  %881 = vmatpush1.bf16.msra.mxu1 %v4342_v13  ;;  %v4365_v28 = vld [vmem:[%s5502_s3 + $0x150] ss:$28 sps:$4 sm:$0xff]   ;;  %v4366_v29 = vld [vmem:[%s5502_s3 + $0x158] ss:$28 sps:$4 sm:$0xff]   ;;  %v4371_v32 = vld [vmem:[%s5502_s3 + $0x188] ss:$28 sps:$4 sm:$0xff]  }
  0x3c   : > { %839 = vmatprep.subr.bf16.mxu0 %v4343_v14  ;;  %882 = vmatprep.subr.bf16.mxu1 %v4345_v15  ;;  %v4369_v31 = vld [vmem:[%s5502_s3 + $0x194] ss:$28 sps:$4 sm:$0xff]   ;;  %v5152_v35 = vld [vmem:[%s5499_s0] sm:$0xff]   ;;  %v4380_v38 = vld [vmem:[%s5502_s3 + $0x4c] ss:$28 sps:$4 sm:$0xff]   ;;  %vm4909_vm0 = vmmov 0  }
  0x3d   : > { %v4372_v33 = vld [vmem:[%s5502_s3 + $0x190] ss:$28 sps:$4 sm:$0xff]   ;;  %v4377_v37 = vld [vmem:[%s5502_s3 + $0x18] ss:$28 sps:$4 sm:$0xff]   ;;  %v4378_v39 = vld [vmem:[%s5502_s3 + $0x48] ss:$28 sps:$4 sm:$0xff]  }
  0x3e   : > { %v4376_v34 = vld [vmem:[%s5502_s3 + $0x14] ss:$28 sps:$4 sm:$0xff]   ;;  %v4384_v41 = vld [vmem:[%s5502_s3 + $0x84] ss:$28 sps:$4 sm:$0xff]   ;;  %v4388_v44 = vld [vmem:[%s5502_s3 + $0xbc] ss:$28 sps:$4 sm:$0xff]  }
  0x3f   : > { %840 = vmatpush1.bf16.msra.mxu0 %v4347_v16  ;;  %883 = vmatpush1.bf16.msra.mxu1 %v4348_v17  ;;  %v4374_v36 = vld [vmem:[%s5502_s3 + $0x10] ss:$28 sps:$4 sm:$0xff]   ;;  %v4382_v42 = vld [vmem:[%s5502_s3 + $0x80] ss:$28 sps:$4 sm:$0xff]   ;;  %v4385_v43 = vld [vmem:[%s5502_s3 + $0x88] ss:$28 sps:$4 sm:$0xff]  }
  0x40   : > { %841 = vmatprep.subr.bf16.mxu0 %v4349_v18  ;;  %884 = vmatprep.subr.bf16.mxu1 %v4351_v19  ;;  %v4381_v40 = vld [vmem:[%s5502_s3 + $0x50] ss:$28 sps:$4 sm:$0xff]   ;;  %v4386_v45 = vld [vmem:[%s5502_s3 + $0xb8] ss:$28 sps:$4 sm:$0xff]   ;;  %v4389_v46 = vld [vmem:[%s5502_s3 + $0xc0] ss:$28 sps:$4 sm:$0xff]  }
  0x41   : > { %v4392_v47 = vld [vmem:[%s5502_s3 + $0xf4] ss:$28 sps:$4 sm:$0xff]   ;;  %v4396_v50 = vld [vmem:[%s5502_s3 + $0x12c] ss:$28 sps:$4 sm:$0xff]   ;;  %v4400_v53 = vld [vmem:[%s5502_s3 + $0x164] ss:$28 sps:$4 sm:$0xff]  }
  0x42   : > { %v4390_v48 = vld [vmem:[%s5502_s3 + $0xf0] ss:$28 sps:$4 sm:$0xff]   ;;  %v4393_v49 = vld [vmem:[%s5502_s3 + $0xf8] ss:$28 sps:$4 sm:$0xff]   ;;  %v4394_v51 = vld [vmem:[%s5502_s3 + $0x128] ss:$28 sps:$4 sm:$0xff]  }
  0x43   : > { %842 = vmatpush1.bf16.msra.mxu0 %v4353_v20  ;;  %885 = vmatpush1.bf16.msra.mxu1 %v4354_v21  ;;  %v4397_v52 = vld [vmem:[%s5502_s3 + $0x130] ss:$28 sps:$4 sm:$0xff]   ;;  %v4398_v54 = vld [vmem:[%s5502_s3 + $0x160] ss:$28 sps:$4 sm:$0xff]   ;;  %v4401_v55 = vld [vmem:[%s5502_s3 + $0x168] ss:$28 sps:$4 sm:$0xff]  }
  0x44   : > { %843 = vmatprep.subr.bf16.mxu0 %v4355_v22  ;;  %886 = vmatprep.subr.bf16.mxu1 %v4357_v23  ;;  %v4404_v56 = vld [vmem:[%s5502_s3 + $0x19c] ss:$28 sps:$4 sm:$0xff]   ;;  %v505_v60 = vshrl.u32 %v504_v59, 7  ;;  %v502_v63 = vld [vmem:[%s5503_s4] sm:$0xff]  ;;  %vm1031_vm1 = vcmask 130048  }
  0x45   : > { %v4402_v57 = vld [vmem:[%s5502_s3 + $0x198] ss:$28 sps:$4 sm:$0xff]   ;;  %v4405_v58 = vld [vmem:[%s5502_s3 + $0x1a0] ss:$28 sps:$4 sm:$0xff]  }
  0x46   : > { %v506_v61 = vsub.s32 0, %v505_v60  ;;  %v514_v62 = vsub.s32 2, %v505_v60  ;;  %v510_v0 = vsub.s32 1, %v505_v60  ;;  %v518_v1 = vsub.s32 3, %v505_v60 }
  0x47   : > { %844 = vmatpush1.bf16.msra.mxu0 %v4359_v24  ;;  %887 = vmatpush1.bf16.msra.mxu1 %v4360_v25 }
  0x48   : > { %845 = vmatprep.subr.bf16.mxu0 %v4361_v26  ;;  %888 = vmatprep.subr.bf16.mxu1 %v4363_v27  ;;  %v507_v4 = vrot.slane %v502_v63, %v506_v61  ;;  %v515_v5 = vrot.slane %v502_v63, %v514_v62  ;;  %v511_v6 = vrot.slane %v502_v63, %v510_v0 }
  0x49   : > { %v519_v7 = vrot.slane %v502_v63, %v518_v1 }
  0x4b   : > { %846 = vmatpush1.bf16.msra.mxu0 %v4365_v28  ;;  %889 = vmatpush1.bf16.msra.mxu1 %v4366_v29 }
  0x4c   : > { %847 = vmatprep.subr.bf16.mxu0 %v4367_v30  ;;  %890 = vmatprep.subr.bf16.mxu1 %v4369_v31 }
  0x4f   : > { %848 = vmatpush1.bf16.msra.mxu0 %v4371_v32  ;;  %891 = vmatpush1.bf16.msra.mxu1 %v4372_v33 }
  0x50   : > { %919 = vmatprep.subr.bf16.mxu0 %v4376_v34  ;;  %4244 = vmatprep.subr.bf16.mxu1 %v4908_v3 }
  0x52   : > { %866 = vmatmul.mubr.bf16.vlgmr.msra.gmra.mrb[0].mxu0 %v5152_v35  ;;  %909 = vmatmul.mubr.bf16.vlgmr.msra.gmra.mrb[0].mxu1 %v5152_v35 }
  0x53   : > { %920 = vmatpush1.bf16.msra.mxu0 %v4374_v36  ;;  %4245 = vmatpush3.bf16.msra.mxu1 %v4377_v37  ;;  %v4406_v36 = vld [vmem:[%s5500_s1] sm:$0xff]   ;;  %v522_v37 = vsub.s32 4, %v505_v60 }
  0x54   : > { %921 = vmatprep.subr.bf16.mxu0 %v4380_v38  ;;  %4246 = vmatprep.subr.bf16.mxu1 %v4908_v3  ;;  %v530_v38 = vsub.s32 6, %v505_v60 }
  0x55   : > { %951 = vmatprep.mubr.bf16.mxu0 %v4907_v2  ;;  %4260 = vmatprep.mubr.msk.bf16.mxu1 %vm4909_vm0, %v4908_v3 }
  0x57   : > { %922 = vmatpush1.bf16.msra.mxu0 %v4378_v39  ;;  %4247 = vmatpush3.bf16.msra.mxu1 %v4381_v40  ;;  %v526_v39 = vsub.s32 5, %v505_v60  ;;  %v523_v40 = vrot.slane %v502_v63, %v522_v37 }
  0x58   : > { %923 = vmatprep.subr.bf16.mxu0 %v4384_v41  ;;  %4248 = vmatprep.subr.bf16.mxu1 %v4908_v3  ;;  %v531_v41 = vrot.slane %v502_v63, %v530_v38 }
  0x5b   : > { %924 = vmatpush1.bf16.msra.mxu0 %v4382_v42  ;;  %4249 = vmatpush3.bf16.msra.mxu1 %v4385_v43  ;;  %v527_v42 = vrot.slane %v502_v63, %v526_v39 }
  0x5c   : > { %925 = vmatprep.subr.bf16.mxu0 %v4388_v44  ;;  %4250 = vmatprep.subr.bf16.mxu1 %v4908_v3 }
  0x5f   : > { %926 = vmatpush1.bf16.msra.mxu0 %v4386_v45  ;;  %4251 = vmatpush3.bf16.msra.mxu1 %v4389_v46 }
  0x60   : > { %927 = vmatprep.subr.bf16.mxu0 %v4392_v47  ;;  %4252 = vmatprep.subr.bf16.mxu1 %v4908_v3 }
  0x63   : > { %928 = vmatpush1.bf16.msra.mxu0 %v4390_v48  ;;  %4253 = vmatpush3.bf16.msra.mxu1 %v4393_v49 }
  0x64   : > { %929 = vmatprep.subr.bf16.mxu0 %v4396_v50  ;;  %4254 = vmatprep.subr.bf16.mxu1 %v4908_v3 }
  0x67   : > { %930 = vmatpush1.bf16.msra.mxu0 %v4394_v51  ;;  %4255 = vmatpush3.bf16.msra.mxu1 %v4397_v52 }
  0x68   : > { %931 = vmatprep.subr.bf16.mxu0 %v4400_v53  ;;  %4256 = vmatprep.subr.bf16.mxu1 %v4908_v3 }
  0x6b   : > { %932 = vmatpush1.bf16.msra.mxu0 %v4398_v54  ;;  %4257 = vmatpush3.bf16.msra.mxu1 %v4401_v55 }
  0x6c   : > { %933 = vmatprep.subr.bf16.mxu0 %v4404_v56  ;;  %4258 = vmatprep.subr.bf16.mxu1 %v4908_v3 }
  0x6f   : > { %934 = vmatpush1.bf16.msra.mxu0 %v4402_v57  ;;  %4259 = vmatpush3.bf16.msra.mxu1 %v4405_v58 }
  0x72   : > { %952 = vmatmul.mubr.bf16.vlgmr.msra.gmra.mrb[4].mxu0 %v5152_v35  ;;  %4261 = vmatmul.mubr.bf16.vlgmr.msra.gmra.mrb[4].mxu1 %v5152_v35 }
  0x73   : > { %1067 = vmatprep.mubr.bf16.mxu0 %v4907_v2  ;;  %1110 = vmatprep.mubr.bf16.mxu1 %v4907_v2 }
 0x125   : > { %v867_v8 = vpop.f32.mrb[0].mxu0  ;;  %v910_v9 = vpop.f32.mrb[0].mxu1 }
 0x126   : > { %v868_v10 = vadd.f32 %v867_v8, %v507_v4  ;;  %v911_v11 = vadd.f32 %v910_v9, %v515_v5  ;;  %v869_v12 = vpop.f32.mrb[1].mxu0  ;;  %v912_v13 = vpop.f32.mrb[1].mxu1 }
 0x127   : > { %v870_v14 = vadd.f32 %v869_v12, %v511_v6  ;;  %v913_v15 = vadd.f32 %v912_v13, %v519_v7  ;;  %v871_v16 = vpop.f32.mrb[2].mxu0  ;;  %v914_v17 = vpop.f32.mrb[2].mxu1 }
 0x128   : > { %v1003_v18 = vmax.f32 %v868_v10, 0.0  ;;  %v1005_v19 = vmax.f32 %v911_v11, 0.0  ;;  %v872_v20 = vadd.f32 %v871_v16, %v507_v4  ;;  %v915_v21 = vadd.f32 %v914_v17, %v515_v5  ;;  %v873_v22 = vpop.f32.mrb[3].mxu0  ;;  %v916_v23 = vpop.f32.mrb[3].mxu1 }
 0x129   : > { %v1006_v24 = vmax.f32 %v913_v15, 0.0  ;;  %v874_v25 = vadd.f32 %v873_v22, %v511_v6  ;;  %v917_v26 = vadd.f32 %v916_v23, %v519_v7  ;;  %v1004_v29 = vmax.f32 %v870_v14, 0.0 }
 0x12a   : > { %v1010_v27 = vmax.f32 %v872_v20, 0.0  ;;  %v1012_v28 = vmax.f32 %v915_v21, 0.0 }
 0x12b   : > { %v1011_v30 = vmax.f32 %v874_v25, 0.0  ;;  %v1013_v31 = vmax.f32 %v917_v26, 0.0 }
 0x12c   : > { %v1017_v32 = vpack.c.bf16 %v1010_v27, %v1003_v18  ;;  %v1019_v33 = vpack.c.bf16 %v1012_v28, %v1005_v19 }
 0x12d   : > { %v1018_v34 = vpack.c.bf16 %v1011_v30, %v1004_v29  ;;  %v1020_v35 = vpack.c.bf16 %v1013_v31, %v1006_v24 }
 0x12f   : > { %1035 = vmatprep.subr.bf16.mxu0 %v1018_v34  ;;  %1078 = vmatprep.subr.bf16.mxu1 %v1020_v35 }
 0x130   : > { %1036 = vmatpush1.bf16.msra.mxu0 %v1017_v32  ;;  %1079 = vmatpush1.bf16.msra.mxu1 %v1019_v33 }
 0x131   : > { %4264 = vmatprep.subr.bf16.mxu1 %v4908_v3 }
 0x133   : > { %3916 = vmatmul.mubr.msk.bf16.vlgmr.msra.gmra.mrb[8].mxu0 %vm1031_vm1, %v4406_v36  ;;  %3917 = vmatmul.mubr.msk.bf16.vlgmr.msra.gmra.mrb[8].mxu1 %vm1031_vm1, %v4406_v36 }
 0x134   : > { %1153 = vmatprep.mubr.bf16.mxu0 %v4907_v2  ;;  %4266 = vmatprep.mubr.msk.bf16.mxu1 %vm4909_vm0, %v4908_v3 }
 0x145   : > { %v953_v43 = vpop.f32.mrb[4].mxu0  ;;  %v996_v44 = vpop.f32.mrb[4].mxu1 }
 0x146   : > { %v954_v45 = vadd.f32 %v953_v43, %v523_v40  ;;  %v997_v46 = vadd.f32 %v996_v44, %v531_v41  ;;  %v955_v47 = vpop.f32.mrb[5].mxu0  ;;  %v4262_v48 = vpop.f32.mrb[5].mxu1 }
 0x147   : > { %v956_v49 = vadd.f32 %v955_v47, %v527_v42  ;;  %v957_v50 = vpop.f32.mrb[6].mxu0  ;;  %v999_v51 = vpop.f32.mrb[6].mxu1 }
 0x148   : > { %v1009_v52 = vmax.f32 %v997_v46, 0.0  ;;  %v958_v2 = vadd.f32 %v957_v50, %v523_v40  ;;  %v1000_v53 = vadd.f32 %v999_v51, %v531_v41  ;;  %v959_v54 = vpop.f32.mrb[7].mxu0  ;;  %v4263_v3 = vpop.f32.mrb[7].mxu1  ;;  %v1007_v56 = vmax.f32 %v954_v45, 0.0 }
 0x149   : > { %v960_v55 = vadd.f32 %v959_v54, %v527_v42  ;;  %v1008_v59 = vmax.f32 %v956_v49, 0.0 }
 0x14a   : > { %v1014_v57 = vmax.f32 %v958_v2, 0.0  ;;  %v1016_v58 = vmax.f32 %v1000_v53, 0.0 }
 0x14b   : > { %v1015_v60 = vmax.f32 %v960_v55, 0.0 }
 0x14c   : > { %v1021_v61 = vpack.c.bf16 %v1014_v57, %v1007_v56  ;;  %v1023_v62 = vpack.c.bf16 %v1016_v58, %v1009_v52 }
 0x14d   : > { %v1022_v63 = vpack.c.bf16 %v1015_v60, %v1008_v59 }
 0x14e   : > { %4265 = vmatpush3.bf16.msra.mxu1 %v1023_v62 }
 0x14f   : > { %1121 = vmatprep.subr.bf16.mxu0 %v1022_v63 }
 0x150   : > { %1122 = vmatpush1.bf16.msra.mxu0 %v1021_v61 }
 0x151   : > { %4267 = vmatmul.mubr.msk.bf16.vlgmr.msra.gmra.mrb[12].mxu1 %vm1031_vm1, %v4406_v36 }
 0x153   : > { %3918 = vmatmul.mubr.msk.bf16.vlgmr.msra.gmra.mrb[12].mxu0 %vm1031_vm1, %v4406_v36 }
 0x206   : > { %v1069_v0 = vpop.f32.mrb[8].mxu0  ;;  %v1112_v1 = vpop.f32.mrb[8].mxu1 }
 0x207   : > { %v1071_v4 = vpop.f32.mrb[9].mxu0  ;;  %v1114_v5 = vpop.f32.mrb[9].mxu1 }
 0x208   : > { %v1073_v6 = vpop.f32.mrb[10].mxu0  ;;  %v1116_v7 = vpop.f32.mrb[10].mxu1 }
 0x209   : > { %v1205_v8 = vpack.c.bf16 %v1073_v6, %v1069_v0  ;;  %v1075_v9 = vpop.f32.mrb[11].mxu0  ;;  %v1207_v10 = vpack.c.bf16 %v1116_v7, %v1112_v1  ;;  %v1118_v11 = vpop.f32.mrb[11].mxu1 }
 0x20a   : > { %v1206_v12 = vpack.c.bf16 %v1075_v9, %v1071_v4  ;;  %v1208_v13 = vpack.c.bf16 %v1118_v11, %v1114_v5 }
 0x20b   : > { %1212 = vst [vmem:[#allocation2] sm:$0xff] %v1205_v8  ;;  %1214 = vst [vmem:[#allocation2 + $0x10] sm:$0xff] %v1207_v10 }
 0x20c   : > { %1213 = vst [vmem:[#allocation2 + $0x8] sm:$0xff] %v1206_v12  ;;  %1215 = vst [vmem:[#allocation2 + $0x18] sm:$0xff] %v1208_v13 }
 0x224   : > { %v1198_v14 = vpop.f32.mrb[12].mxu1 }
 0x225   : > { %v4268_v15 = vpop.f32.mrb[13].mxu1 }
 0x226   : > { %v1155_v16 = vpop.f32.mrb[12].mxu0  ;;  %v1201_v17 = vpop.f32.mrb[14].mxu1 }
 0x227   : > { %v1157_v18 = vpop.f32.mrb[13].mxu0  ;;  %v1211_v19 = vpack.c.bf16 %v1201_v17, %v1198_v14  ;;  %v4269_v20 = vpop.f32.mrb[15].mxu1 }
 0x228   : > { %v1159_v21 = vpop.f32.mrb[14].mxu0 }
 0x229   : > { %v1209_v22 = vpack.c.bf16 %v1159_v21, %v1155_v16  ;;  %v1161_v23 = vpop.f32.mrb[15].mxu0  ;;  %1218 = vst [vmem:[#allocation2 + $0x30] sm:$0xff] %v1211_v19 }
 0x22a   : > { %v1210_v24 = vpack.c.bf16 %v1161_v23, %v1157_v18 }
 0x22b   : > { %1216 = vst [vmem:[#allocation2 + $0x20] sm:$0xff] %v1209_v22 }
 0x22c   : > { %1217 = vst [vmem:[#allocation2 + $0x28] sm:$0xff] %v1210_v24 }
 0x22d PF: > { %v4407_v25 = vld [vmem:[%s5031_s27 + $0x104] ss:$8 sps:$4 sm:$0xff]   ;;  %v4409_v26 = vld [vmem:[%s5031_s27 + $0x100] ss:$8 sps:$4 sm:$0xff]   ;;  %v4410_v27 = vld [vmem:[%s5031_s27 + $0x114] ss:$8 sps:$4 sm:$0xff]  }
 0x22e   : > { %1961 = vmatprep.subr.bf16.mxu0 %v4407_v25  ;;  %v4412_v28 = vld [vmem:[%s5031_s27 + $0x110] ss:$8 sps:$4 sm:$0xff]   ;;  %v4413_v29 = vld [vmem:[%s5031_s27 + $0x124] ss:$8 sps:$4 sm:$0xff]   ;;  %v4415_v30 = vld [vmem:[%s5031_s27 + $0x120] ss:$8 sps:$4 sm:$0xff]  }
 0x22f   : > { %1962 = vmatpush1.bf16.msra.mxu0 %v4409_v26  ;;  %v4416_v31 = vld [vmem:[%s5031_s27 + $0x134] ss:$8 sps:$4 sm:$0xff]   ;;  %v4418_v32 = vld [vmem:[%s5031_s27 + $0x130] ss:$8 sps:$4 sm:$0xff]   ;;  %v4419_v33 = vld [vmem:[%s5031_s27 + $0x144] ss:$8 sps:$4 sm:$0xff]  }
 0x230   : > { %1963 = vmatprep.subr.bf16.mxu0 %v4410_v27  ;;  %v4421_v34 = vld [vmem:[%s5031_s27 + $0x140] ss:$8 sps:$4 sm:$0xff]   ;;  %v4422_v35 = vld [vmem:[%s5031_s27 + $0x154] ss:$8 sps:$4 sm:$0xff]   ;;  %v4424_v36 = vld [vmem:[%s5031_s27 + $0x150] ss:$8 sps:$4 sm:$0xff]  }
 0x231   : > { %v4425_v37 = vld [vmem:[%s5031_s27 + $0x164] ss:$8 sps:$4 sm:$0xff]   ;;  %v1230_v38 = vld [vmem:[#allocation2 + $0x18] sm:$0xff]  ;;  %v4427_v39 = vld [vmem:[%s5031_s27 + $0x160] ss:$8 sps:$4 sm:$0xff]   ;;  %p4096_p10 = scmp.ne.s32.totalorder %s4978_s18, 3 }
 0x232   : > { %1993 = vmatprep.mubr.bf16.mxu0 %v1230_v38  ;;  %v4428_v40 = vld [vmem:[%s5031_s27 + $0x174] ss:$8 sps:$4 sm:$0xff]   ;;  %v4430_v41 = vld [vmem:[%s5031_s27 + $0x170] ss:$8 sps:$4 sm:$0xff]   ;;  %v4431_v42 = vld [vmem:[%s5031_s27 + $0x184] ss:$8 sps:$4 sm:$0xff]  }
 0x233   : > { %1964 = vmatpush1.bf16.msra.mxu0 %v4412_v28  ;;  %v4433_v43 = vld [vmem:[%s5031_s27 + $0x180] ss:$8 sps:$4 sm:$0xff]   ;;  %v4434_v44 = vld [vmem:[%s5031_s27 + $0x194] ss:$8 sps:$4 sm:$0xff]   ;;  %v4476_v45 = vld [vmem:[%s5031_s27 + $0x4] ss:$8 sps:$4 sm:$0xff]  }
 0x234   : > { %1965 = vmatprep.subr.bf16.mxu0 %v4413_v29  ;;  %v4478_v46 = vld [vmem:[%s5031_s27] ss:$8 sps:$4 sm:$0xff]   ;;  %v4436_v47 = vld [vmem:[%s5031_s27 + $0x190] ss:$8 sps:$4 sm:$0xff]   ;;  %1918 = vmatprep.subr.bf16.mxu1 %v4476_v45  ;;  %v4482_v48 = vld [vmem:[%s5031_s27 + $0x14] ss:$8 sps:$4 sm:$0xff]  }
 0x235   : > { %1919 = vmatpush1.bf16.msra.mxu1 %v4478_v46  ;;  %v4484_v49 = vld [vmem:[%s5031_s27 + $0x10] ss:$8 sps:$4 sm:$0xff]   ;;  %v4437_v50 = vld [vmem:[%s5031_s27 + $0x1a4] ss:$8 sps:$4 sm:$0xff]   ;;  %v4439_v52 = vld [vmem:[%s5031_s27 + $0x1a0] ss:$8 sps:$4 sm:$0xff]  }
 0x236   : > { %1920 = vmatprep.subr.bf16.mxu1 %v4482_v48  ;;  %v4488_v51 = vld [vmem:[%s5031_s27 + $0x24] ss:$8 sps:$4 sm:$0xff]   ;;  %v4490_v2 = vld [vmem:[%s5031_s27 + $0x20] ss:$8 sps:$4 sm:$0xff]   ;;  %v4440_v53 = vld [vmem:[%s5031_s27 + $0x1b4] ss:$8 sps:$4 sm:$0xff]  }
 0x237   : > { %1966 = vmatpush1.bf16.msra.mxu0 %v4415_v30  ;;  %v4494_v54 = vld [vmem:[%s5031_s27 + $0x34] ss:$8 sps:$4 sm:$0xff]   ;;  %v4442_v3 = vld [vmem:[%s5031_s27 + $0x1b0] ss:$8 sps:$4 sm:$0xff]   ;;  %v4443_v56 = vld [vmem:[%s5031_s27 + $0x1c4] ss:$8 sps:$4 sm:$0xff]  }
 0x238   : > { %1967 = vmatprep.subr.bf16.mxu0 %v4416_v31  ;;  %v4496_v55 = vld [vmem:[%s5031_s27 + $0x30] ss:$8 sps:$4 sm:$0xff]   ;;  %v4500_v57 = vld [vmem:[%s5031_s27 + $0x44] ss:$8 sps:$4 sm:$0xff]   ;;  %v4445_v58 = vld [vmem:[%s5031_s27 + $0x1c0] ss:$8 sps:$4 sm:$0xff]  }
 0x239   : > { %1921 = vmatpush1.bf16.msra.mxu1 %v4484_v49  ;;  %v4502_v59 = vld [vmem:[%s5031_s27 + $0x40] ss:$8 sps:$4 sm:$0xff]   ;;  %v4446_v60 = vld [vmem:[%s5031_s27 + $0x1d4] ss:$8 sps:$4 sm:$0xff]   ;;  %v4448_v62 = vld [vmem:[%s5031_s27 + $0x1d0] ss:$8 sps:$4 sm:$0xff]  }
 0x23a   : > { %1922 = vmatprep.subr.bf16.mxu1 %v4488_v51  ;;  %v4506_v61 = vld [vmem:[%s5031_s27 + $0x54] ss:$8 sps:$4 sm:$0xff]   ;;  %v4508_v63 = vld [vmem:[%s5031_s27 + $0x50] ss:$8 sps:$4 sm:$0xff]   ;;  %v4449_v0 = vld [vmem:[%s5031_s27 + $0x1e4] ss:$8 sps:$4 sm:$0xff]  }
 0x23b   : > { %1968 = vmatpush1.bf16.msra.mxu0 %v4418_v32  ;;  %v4512_v1 = vld [vmem:[%s5031_s27 + $0x64] ss:$8 sps:$4 sm:$0xff]   ;;  %v4451_v4 = vld [vmem:[%s5031_s27 + $0x1e0] ss:$8 sps:$4 sm:$0xff]   ;;  %v4452_v6 = vld [vmem:[%s5031_s27 + $0x1f4] ss:$8 sps:$4 sm:$0xff]  }
 0x23c   : > { %1969 = vmatprep.subr.bf16.mxu0 %v4419_v33  ;;  %v4514_v5 = vld [vmem:[%s5031_s27 + $0x60] ss:$8 sps:$4 sm:$0xff]   ;;  %v4518_v7 = vld [vmem:[%s5031_s27 + $0x74] ss:$8 sps:$4 sm:$0xff]   ;;  %v4454_v8 = vld [vmem:[%s5031_s27 + $0x1f0] ss:$8 sps:$4 sm:$0xff]  }
 0x23d   : > { %1923 = vmatpush1.bf16.msra.mxu1 %v4490_v2  ;;  %v4457_v9 = vld [vmem:[%s5031_s27 + $0x204] ss:$8 sps:$4 sm:$0xff]   ;;  %v4520_v10 = vld [vmem:[%s5031_s27 + $0x70] ss:$8 sps:$4 sm:$0xff]   ;;  %v4455_v12 = vld [vmem:[%s5031_s27 + $0x200] ss:$8 sps:$4 sm:$0xff]  }
 0x23e   : > { %1924 = vmatprep.subr.bf16.mxu1 %v4494_v54  ;;  %v4524_v11 = vld [vmem:[%s5031_s27 + $0x84] ss:$8 sps:$4 sm:$0xff]   ;;  %v1229_v13 = vld [vmem:[#allocation2 + $0x10] sm:$0xff]  ;;  %v4526_v15 = vld [vmem:[%s5031_s27 + $0x80] ss:$8 sps:$4 sm:$0xff]   ;;  %vm2635_vm2 = vcmask (!%p4096_p10), 130048  }
 0x23f   : > { %1970 = vmatpush1.bf16.msra.mxu0 %v4421_v34  ;;  %v4460_v14 = vld [vmem:[%s5031_s27 + $0x214] ss:$8 sps:$4 sm:$0xff]   ;;  %v4458_v17 = vld [vmem:[%s5031_s27 + $0x210] ss:$8 sps:$4 sm:$0xff]   ;;  %v1232_v18 = vld [vmem:[#allocation2 + $0x28] sm:$0xff] }
 0x240   : > { %1971 = vmatprep.subr.bf16.mxu0 %v4422_v35  ;;  %v4530_v16 = vld [vmem:[%s5031_s27 + $0x94] ss:$8 sps:$4 sm:$0xff]   ;;  %v4463_v19 = vld [vmem:[%s5031_s27 + $0x224] ss:$8 sps:$4 sm:$0xff]   ;;  %v4532_v20 = vld [vmem:[%s5031_s27 + $0x90] ss:$8 sps:$4 sm:$0xff]  }
 0x241   : > { %1925 = vmatpush1.bf16.msra.mxu1 %v4496_v55  ;;  %v4536_v21 = vld [vmem:[%s5031_s27 + $0xa4] ss:$8 sps:$4 sm:$0xff]   ;;  %v4461_v22 = vld [vmem:[%s5031_s27 + $0x220] ss:$8 sps:$4 sm:$0xff]   ;;  %v4466_v23 = vld [vmem:[%s5031_s27 + $0x234] ss:$8 sps:$4 sm:$0xff]  }
 0x242   : > { %1926 = vmatprep.subr.bf16.mxu1 %v4500_v57  ;;  %v4538_v24 = vld [vmem:[%s5031_s27 + $0xa0] ss:$8 sps:$4 sm:$0xff]   ;;  %v4542_v25 = vld [vmem:[%s5031_s27 + $0xb4] ss:$8 sps:$4 sm:$0xff]   ;;  %v4464_v26 = vld [vmem:[%s5031_s27 + $0x230] ss:$8 sps:$4 sm:$0xff]  }
 0x243   : > { %1972 = vmatpush1.bf16.msra.mxu0 %v4424_v36  ;;  %v1228_v27 = vld [vmem:[#allocation2 + $0x8] sm:$0xff]  ;;  %v4544_v28 = vld [vmem:[%s5031_s27 + $0xb0] ss:$8 sps:$4 sm:$0xff]   ;;  %v4472_v33 = vld [vmem:[%s5031_s27 + $0x254] ss:$8 sps:$4 sm:$0xff]  }
 0x244   : > { %1973 = vmatprep.subr.bf16.mxu0 %v4425_v37  ;;  %v4469_v29 = vld [vmem:[%s5031_s27 + $0x244] ss:$8 sps:$4 sm:$0xff]   ;;  %1950 = vmatprep.mubr.bf16.mxu1 %v1228_v27  ;;  %v4467_v31 = vld [vmem:[%s5031_s27 + $0x240] ss:$8 sps:$4 sm:$0xff]   ;;  %v4554_v34 = vld [vmem:[%s5031_s27 + $0xd4] ss:$8 sps:$4 sm:$0xff]  }
 0x245   : > { %1927 = vmatpush1.bf16.msra.mxu1 %v4502_v59  ;;  %v4548_v30 = vld [vmem:[%s5031_s27 + $0xc4] ss:$8 sps:$4 sm:$0xff]   ;;  %v4550_v32 = vld [vmem:[%s5031_s27 + $0xc0] ss:$8 sps:$4 sm:$0xff]   ;;  %v4470_v35 = vld [vmem:[%s5031_s27 + $0x250] ss:$8 sps:$4 sm:$0xff]  }
 0x246   : > { %1928 = vmatprep.subr.bf16.mxu1 %v4506_v61  ;;  %v4556_v36 = vld [vmem:[%s5031_s27 + $0xd0] ss:$8 sps:$4 sm:$0xff]   ;;  %v4475_v37 = vld [vmem:[%s5031_s27 + $0x264] ss:$8 sps:$4 sm:$0xff]   ;;  %v4493_v49 = vld [vmem:[%s5031_s27 + $0x294] ss:$8 sps:$4 sm:$0xff]  }
 0x247   : > { %1974 = vmatpush1.bf16.msra.mxu0 %v4427_v39  ;;  %v4560_v38 = vld [vmem:[%s5031_s27 + $0xe4] ss:$8 sps:$4 sm:$0xff]   ;;  %v4473_v39 = vld [vmem:[%s5031_s27 + $0x260] ss:$8 sps:$4 sm:$0xff]   ;;  %v4553_v27 = vld [vmem:[%s5031_s27 + $0x334] ss:$8 sps:$4 sm:$0xff]  }
 0x248   : > { %1975 = vmatprep.subr.bf16.mxu0 %v4428_v40  ;;  %v4562_v40 = vld [vmem:[%s5031_s27 + $0xe0] ss:$8 sps:$4 sm:$0xff]   ;;  %v4487_v45 = vld [vmem:[%s5031_s27 + $0x284] ss:$8 sps:$4 sm:$0xff]  }
 0x249   : > { %1929 = vmatpush1.bf16.msra.mxu1 %v4508_v63  ;;  %v4577_v46 = vld [vmem:[%s5036_s12 + $0x4] ss:$16 sps:$4 sm:$0xff]   ;;  %v4578_v2 = vld [vmem:[%s5036_s12 + $0x20] ss:$16 sps:$4 sm:$0xff]  }
 0x24a   : > { %1930 = vmatprep.subr.bf16.mxu1 %v4512_v1  ;;  %v1227_v48 = vld [vmem:[#allocation2] sm:$0xff] }
 0x24b   : > { %1976 = vmatpush1.bf16.msra.mxu0 %v4430_v41  ;;  %v4481_v41 = vld [vmem:[%s5031_s27 + $0x274] ss:$8 sps:$4 sm:$0xff]   ;;  %v4581_v55 = vld [vmem:[%s5036_s12 + $0x40] ss:$16 sps:$4 sm:$0xff]  }
 0x24c   : > { %1977 = vmatprep.subr.bf16.mxu0 %v4431_v42  ;;  %v4566_v42 = vld [vmem:[%s5031_s27 + $0xf4] ss:$8 sps:$4 sm:$0xff]   ;;  %v4584_v59 = vld [vmem:[%s5036_s12 + $0x60] ss:$16 sps:$4 sm:$0xff]  }
 0x24d   : > { %1931 = vmatpush1.bf16.msra.mxu1 %v4514_v5  ;;  %v4580_v51 = vld [vmem:[%s5036_s12 + $0x24] ss:$16 sps:$4 sm:$0xff]   ;;  %v4587_v63 = vld [vmem:[%s5036_s12 + $0x80] ss:$16 sps:$4 sm:$0xff]  }
 0x24e   : > { %1932 = vmatprep.subr.bf16.mxu1 %v4518_v7  ;;  %v4583_v54 = vld [vmem:[%s5036_s12 + $0x44] ss:$16 sps:$4 sm:$0xff]   ;;  %v4590_v5 = vld [vmem:[%s5036_s12 + $0xa0] ss:$16 sps:$4 sm:$0xff]  }
 0x24f   : > { %1978 = vmatpush1.bf16.msra.mxu0 %v4433_v43  ;;  %v4479_v43 = vld [vmem:[%s5031_s27 + $0x270] ss:$8 sps:$4 sm:$0xff]   ;;  %v4586_v57 = vld [vmem:[%s5036_s12 + $0x64] ss:$16 sps:$4 sm:$0xff]  }
 0x250   : > { %1979 = vmatprep.subr.bf16.mxu0 %v4434_v44  ;;  %v4568_v44 = vld [vmem:[%s5031_s27 + $0xf0] ss:$8 sps:$4 sm:$0xff]   ;;  %v4589_v61 = vld [vmem:[%s5036_s12 + $0x84] ss:$16 sps:$4 sm:$0xff]  }
 0x251   : > { %1933 = vmatpush1.bf16.msra.mxu1 %v4520_v10  ;;  %v4592_v1 = vld [vmem:[%s5036_s12 + $0xa4] ss:$16 sps:$4 sm:$0xff]  }
 0x252   : > { %1934 = vmatprep.subr.bf16.mxu1 %v4524_v11  ;;  %v4595_v7 = vld [vmem:[%s5036_s12 + $0xc4] ss:$16 sps:$4 sm:$0xff]  }
 0x253   : > { %1980 = vmatpush1.bf16.msra.mxu0 %v4436_v47  ;;  %v4485_v47 = vld [vmem:[%s5031_s27 + $0x280] ss:$8 sps:$4 sm:$0xff]   ;;  %v4529_v10 = vld [vmem:[%s5031_s27 + $0x2f4] ss:$8 sps:$4 sm:$0xff]  }
 0x254   : > { %1981 = vmatprep.subr.bf16.mxu0 %v4437_v50  ;;  %v4575_v50 = vld [vmem:[%s5036_s12] ss:$16 sps:$4 sm:$0xff]   ;;  %v4598_v11 = vld [vmem:[%s5036_s12 + $0xe4] ss:$16 sps:$4 sm:$0xff]  }
 0x255   : > { %1935 = vmatpush1.bf16.msra.mxu1 %v4526_v15  ;;  %v4601_v15 = vld [vmem:[%s5036_s12 + $0x104] ss:$16 sps:$4 sm:$0xff]  }
 0x256   : > { %1936 = vmatprep.subr.bf16.mxu1 %v4530_v16  ;;  %v4533_v16 = vld [vmem:[%s5031_s27 + $0x300] ss:$8 sps:$4 sm:$0xff]  }
 0x257   : > { %1982 = vmatpush1.bf16.msra.mxu0 %v4439_v52  ;;  %v4491_v52 = vld [vmem:[%s5031_s27 + $0x290] ss:$8 sps:$4 sm:$0xff]  }
 0x258   : > { %1983 = vmatprep.subr.bf16.mxu0 %v4440_v53  ;;  %v4499_v53 = vld [vmem:[%s5031_s27 + $0x2a4] ss:$8 sps:$4 sm:$0xff]  }
 0x259   : > { %1937 = vmatpush1.bf16.msra.mxu1 %v4532_v20  ;;  %v4604_v20 = vld [vmem:[%s5036_s12 + $0x124] ss:$16 sps:$4 sm:$0xff]  }
 0x25a   : > { %1938 = vmatprep.subr.bf16.mxu1 %v4536_v21  ;;  %v4539_v21 = vld [vmem:[%s5031_s27 + $0x310] ss:$8 sps:$4 sm:$0xff]  }
 0x25b   : > { %1984 = vmatpush1.bf16.msra.mxu0 %v4442_v3  ;;  %v4497_v3 = vld [vmem:[%s5031_s27 + $0x2a0] ss:$8 sps:$4 sm:$0xff]  }
 0x25c   : > { %1985 = vmatprep.subr.bf16.mxu0 %v4443_v56  ;;  %v4505_v56 = vld [vmem:[%s5031_s27 + $0x2b4] ss:$8 sps:$4 sm:$0xff]  }
 0x25d   : > { %1939 = vmatpush1.bf16.msra.mxu1 %v4538_v24  ;;  %v4602_v24 = vld [vmem:[%s5036_s12 + $0x120] ss:$16 sps:$4 sm:$0xff]  }
 0x25e   : > { %1940 = vmatprep.subr.bf16.mxu1 %v4542_v25  ;;  %v4607_v25 = vld [vmem:[%s5036_s12 + $0x144] ss:$16 sps:$4 sm:$0xff]  }
 0x25f   : > { %1986 = vmatpush1.bf16.msra.mxu0 %v4445_v58  ;;  %v4503_v58 = vld [vmem:[%s5031_s27 + $0x2b0] ss:$8 sps:$4 sm:$0xff]  }
 0x260   : > { %1987 = vmatprep.subr.bf16.mxu0 %v4446_v60  ;;  %v4511_v60 = vld [vmem:[%s5031_s27 + $0x2c4] ss:$8 sps:$4 sm:$0xff]  }
 0x261   : > { %1941 = vmatpush1.bf16.msra.mxu1 %v4544_v28  ;;  %v4605_v28 = vld [vmem:[%s5036_s12 + $0x140] ss:$16 sps:$4 sm:$0xff]  }
 0x262   : > { %1942 = vmatprep.subr.bf16.mxu1 %v4548_v30  ;;  %v4551_v30 = vld [vmem:[%s5031_s27 + $0x330] ss:$8 sps:$4 sm:$0xff]  }
 0x263   : > { %1988 = vmatpush1.bf16.msra.mxu0 %v4448_v62  ;;  %v4509_v62 = vld [vmem:[%s5031_s27 + $0x2c0] ss:$8 sps:$4 sm:$0xff]  }
 0x264   : > { %1989 = vmatprep.subr.bf16.mxu0 %v4449_v0  ;;  %v4517_v0 = vld [vmem:[%s5031_s27 + $0x2d4] ss:$8 sps:$4 sm:$0xff]  }
 0x265   : > { %1943 = vmatpush1.bf16.msra.mxu1 %v4550_v32  ;;  %v4608_v32 = vld [vmem:[%s5036_s12 + $0x160] ss:$16 sps:$4 sm:$0xff]  }
 0x266   : > { %1944 = vmatprep.subr.bf16.mxu1 %v4554_v34  ;;  %v4557_v34 = vld [vmem:[%s5031_s27 + $0x340] ss:$8 sps:$4 sm:$0xff]  }
 0x267   : > { %1990 = vmatpush1.bf16.msra.mxu0 %v4451_v4  ;;  %v4515_v4 = vld [vmem:[%s5031_s27 + $0x2d0] ss:$8 sps:$4 sm:$0xff]  }
 0x268   : > { %1991 = vmatprep.subr.bf16.mxu0 %v4452_v6  ;;  %v4523_v6 = vld [vmem:[%s5031_s27 + $0x2e4] ss:$8 sps:$4 sm:$0xff]  }
 0x269   : > { %1945 = vmatpush1.bf16.msra.mxu1 %v4556_v36  ;;  %v4611_v36 = vld [vmem:[%s5036_s12 + $0x180] ss:$16 sps:$4 sm:$0xff]  }
 0x26a   : > { %1946 = vmatprep.subr.bf16.mxu1 %v4560_v38  ;;  %v4571_v38 = vld [vmem:[%s5031_s27 + $0x364] ss:$8 sps:$4 sm:$0xff]  }
 0x26b   : > { %1992 = vmatpush1.bf16.msra.mxu0 %v4454_v8  ;;  %v4521_v8 = vld [vmem:[%s5031_s27 + $0x2e0] ss:$8 sps:$4 sm:$0xff]  }
 0x26c   : > { %2004 = vmatprep.subr.bf16.mxu0 %v4457_v9  ;;  %v4593_v9 = vld [vmem:[%s5036_s12 + $0xc0] ss:$16 sps:$4 sm:$0xff]  }
 0x26d   : > { %1947 = vmatpush1.bf16.msra.mxu1 %v4562_v40  ;;  %v4574_v40 = vld [vmem:[%s5031_s27 + $0x374] ss:$8 sps:$4 sm:$0xff]  }
 0x26e   : > { %1994 = vmatmul.mubr.bf16.vlgmr.msra.gmra.mrb[0].mxu0 %v1229_v13  ;;  %1948 = vmatprep.subr.bf16.mxu1 %v4566_v42  ;;  %v4596_v13 = vld [vmem:[%s5036_s12 + $0xe0] ss:$16 sps:$4 sm:$0xff]  }
 0x26f   : > { %2005 = vmatpush1.bf16.msra.mxu0 %v4455_v12  ;;  %2036 = vmatprep.mubr.bf16.mxu0 %v1232_v18  ;;  %v4527_v12 = vld [vmem:[%s5031_s27 + $0x2f0] ss:$8 sps:$4 sm:$0xff]   ;;  %v4541_v18 = vld [vmem:[%s5031_s27 + $0x314] ss:$8 sps:$4 sm:$0xff]  }
 0x270   : > { %2006 = vmatprep.subr.bf16.mxu0 %v4460_v14  ;;  %v4535_v14 = vld [vmem:[%s5031_s27 + $0x304] ss:$8 sps:$4 sm:$0xff]   ;;  %v1233_v42 = vld [vmem:[#allocation2 + $0x30] sm:$0xff] }
 0x271   : > { %1949 = vmatpush1.bf16.msra.mxu1 %v4568_v44  ;;  %v4616_v44 = vld [vmem:[%s5036_s12 + $0x1a4] ss:$16 sps:$4 sm:$0xff]  }
 0x272   : > { %2488 = vmatprep.subr.bf16.mxu1 %v4577_v46  ;;  %v4617_v46 = vld [vmem:[%s5036_s12 + $0x1c0] ss:$16 sps:$4 sm:$0xff]  }
 0x273   : > { %2007 = vmatpush1.bf16.msra.mxu0 %v4458_v17  ;;  %v1231_v17 = vld [vmem:[#allocation2 + $0x20] sm:$0xff] }
 0x274   : > { %2008 = vmatprep.subr.bf16.mxu0 %v4463_v19  ;;  %1951 = vmatmul.mubr.bf16.vlgmr.msra.gmra.mrb[0].mxu1 %v1227_v48  ;;  %v4599_v19 = vld [vmem:[%s5036_s12 + $0x100] ss:$16 sps:$4 sm:$0xff]  }
 0x275   : > { %2489 = vmatpush1.bf16.msra.mxu1 %v4575_v50  ;;  %v4620_v48 = vld [vmem:[%s5036_s12 + $0x1e0] ss:$16 sps:$4 sm:$0xff]  }
 0x276   : > { %2490 = vmatprep.subr.bf16.mxu1 %v4580_v51 }
 0x277   : > { %2009 = vmatpush1.bf16.msra.mxu0 %v4461_v22  ;;  %v4910_v22 = vmov 0  }
 0x278   : > { %2010 = vmatprep.subr.bf16.mxu0 %v4466_v23  ;;  %v4547_v23 = vld [vmem:[%s5031_s27 + $0x324] ss:$8 sps:$4 sm:$0xff]  }
 0x279   : > { %2491 = vmatpush1.bf16.msra.mxu1 %v4578_v2 }
 0x27a   : > { %2492 = vmatprep.subr.bf16.mxu1 %v4583_v54 }
 0x27b   : > { %2011 = vmatpush1.bf16.msra.mxu0 %v4464_v26  ;;  %v4545_v26 = vld [vmem:[%s5031_s27 + $0x320] ss:$8 sps:$4 sm:$0xff]  }
 0x27c   : > { %2012 = vmatprep.subr.bf16.mxu0 %v4469_v29  ;;  %v4610_v29 = vld [vmem:[%s5036_s12 + $0x164] ss:$16 sps:$4 sm:$0xff]  }
 0x27d   : > { %2493 = vmatpush1.bf16.msra.mxu1 %v4581_v55  ;;  %v1346_v55 = vld [vmem:[%s422_s24] sm:$0x3] }
 0x27e   : > { %2494 = vmatprep.subr.bf16.mxu1 %v4586_v57 }
 0x27f   : > { %2013 = vmatpush1.bf16.msra.mxu0 %v4467_v31  ;;  %v4559_v31 = vld [vmem:[%s5031_s27 + $0x344] ss:$8 sps:$4 sm:$0xff]  }
 0x280   : > { %2014 = vmatprep.subr.bf16.mxu0 %v4472_v33  ;;  %v4613_v33 = vld [vmem:[%s5036_s12 + $0x184] ss:$16 sps:$4 sm:$0xff]  }
 0x281   : > { %2495 = vmatpush1.bf16.msra.mxu1 %v4584_v59 }
 0x282   : > { %2496 = vmatprep.subr.bf16.mxu1 %v4589_v61 }
 0x283   : > { %2015 = vmatpush1.bf16.msra.mxu0 %v4470_v35  ;;  %v4565_v35 = vld [vmem:[%s5031_s27 + $0x354] ss:$8 sps:$4 sm:$0xff]  }
 0x284   : > { %2016 = vmatprep.subr.bf16.mxu0 %v4475_v37  ;;  %v4563_v37 = vld [vmem:[%s5031_s27 + $0x350] ss:$8 sps:$4 sm:$0xff]  }
 0x285   : > { %2497 = vmatpush1.bf16.msra.mxu1 %v4587_v63 }
 0x286   : > { %2498 = vmatprep.subr.bf16.mxu1 %v4592_v1 }
 0x287   : > { %2017 = vmatpush1.bf16.msra.mxu0 %v4473_v39  ;;  %v4569_v39 = vld [vmem:[%s5031_s27 + $0x360] ss:$8 sps:$4 sm:$0xff]  }
 0x288   : > { %2018 = vmatprep.subr.bf16.mxu0 %v4481_v41  ;;  %v4572_v41 = vld [vmem:[%s5031_s27 + $0x370] ss:$8 sps:$4 sm:$0xff]  }
 0x289   : > { %2499 = vmatpush1.bf16.msra.mxu1 %v4590_v5 }
 0x28a   : > { %2500 = vmatprep.subr.bf16.mxu1 %v4595_v7 }
 0x28b   : > { %2019 = vmatpush1.bf16.msra.mxu0 %v4479_v43  ;;  %v4614_v43 = vld [vmem:[%s5036_s12 + $0x1a0] ss:$16 sps:$4 sm:$0xff]  }
 0x28c   : > { %2020 = vmatprep.subr.bf16.mxu0 %v4487_v45  ;;  %v4619_v45 = vld [vmem:[%s5036_s12 + $0x1c4] ss:$16 sps:$4 sm:$0xff]  }
 0x28d   : > { %2501 = vmatpush1.bf16.msra.mxu1 %v4593_v9 }
 0x28e   : > { %2502 = vmatprep.subr.bf16.mxu1 %v4598_v11 }
 0x28f   : > { %2021 = vmatpush1.bf16.msra.mxu0 %v4485_v47  ;;  %v4622_v47 = vld [vmem:[%s5036_s12 + $0x1e4] ss:$16 sps:$4 sm:$0xff]  }
 0x290   : > { %2022 = vmatprep.subr.bf16.mxu0 %v4493_v49  ;;  %v4625_v49 = vld [vmem:[%s5036_s12 + $0xc] ss:$16 sps:$4 sm:$0xff]  }
 0x291   : > { %2503 = vmatpush1.bf16.msra.mxu1 %v4596_v13 }
 0x292   : > { %2504 = vmatprep.subr.bf16.mxu1 %v4601_v15  ;;  %v4623_v15 = vld [vmem:[%s5036_s12 + $0x8] ss:$16 sps:$4 sm:$0xff]  }
 0x293   : > { %2023 = vmatpush1.bf16.msra.mxu0 %v4491_v52 }
 0x294   : > { %2024 = vmatprep.subr.bf16.mxu0 %v4499_v53  ;;  %v1348_v53 = vlaneseq }
 0x295   : > { %2505 = vmatpush1.bf16.msra.mxu1 %v4599_v19  ;;  %v4629_v19 = vld [vmem:[%s5036_s12 + $0x48] ss:$16 sps:$4 sm:$0xff]  }
 0x296   : > { %2506 = vmatprep.subr.bf16.mxu1 %v4604_v20  ;;  %v5399_v54 = vshrl.u32 %v1348_v53, 7  ;;  %v4634_v20 = vld [vmem:[%s5036_s12 + $0x6c] ss:$16 sps:$4 sm:$0xff]  }
 0x297   : > { %2025 = vmatpush1.bf16.msra.mxu0 %v4497_v3 }
 0x298   : > { %2026 = vmatprep.subr.bf16.mxu0 %v4505_v56  ;;  %v5402_v3 = vsub.s32 0, %v5399_v54  ;;  %v5410_v56 = vsub.s32 1, %v5399_v54 }
 0x299   : > { %2507 = vmatpush1.bf16.msra.mxu1 %v4602_v24  ;;  %v4640_v24 = vld [vmem:[%s5036_s12 + $0xac] ss:$16 sps:$4 sm:$0xff]  }
 0x29a   : > { %2508 = vmatprep.subr.bf16.mxu1 %v4607_v25  ;;  %v1351_v57 = vrot.slane %v1346_v55, %v5402_v3  ;;  %v4638_v25 = vld [vmem:[%s5036_s12 + $0xa8] ss:$16 sps:$4 sm:$0xff]  }
 0x29b   : > { %2027 = vmatpush1.bf16.msra.mxu0 %v4503_v58  ;;  %v1355_v58 = vrot.slane %v1346_v55, %v5410_v56 }
 0x29c   : > { %2028 = vmatprep.subr.bf16.mxu0 %v4511_v60 }
 0x29d   : > { %2509 = vmatpush1.bf16.msra.mxu1 %v4605_v28  ;;  %v4646_v28 = vld [vmem:[%s5036_s12 + $0xec] ss:$16 sps:$4 sm:$0xff]  }
 0x29e   : > { %2510 = vmatprep.subr.bf16.mxu1 %v4610_v29  ;;  %v4644_v29 = vld [vmem:[%s5036_s12 + $0xe8] ss:$16 sps:$4 sm:$0xff]  }
 0x29f   : > { %2029 = vmatpush1.bf16.msra.mxu0 %v4509_v62 }
 0x2a0   : > { %2030 = vmatprep.subr.bf16.mxu0 %v4517_v0 }
 0x2a1   : > { %2511 = vmatpush1.bf16.msra.mxu1 %v4608_v32  ;;  %v4652_v32 = vld [vmem:[%s5036_s12 + $0x12c] ss:$16 sps:$4 sm:$0xff]  }
 0x2a2   : > { %2512 = vmatprep.subr.bf16.mxu1 %v4613_v33  ;;  %v4650_v33 = vld [vmem:[%s5036_s12 + $0x128] ss:$16 sps:$4 sm:$0xff]  }
 0x2a3   : > { %2031 = vmatpush1.bf16.msra.mxu0 %v4515_v4 }
 0x2a4   : > { %2032 = vmatprep.subr.bf16.mxu0 %v4523_v6 }
 0x2a5   : > { %2513 = vmatpush1.bf16.msra.mxu1 %v4611_v36  ;;  %v4658_v36 = vld [vmem:[%s5036_s12 + $0x16c] ss:$16 sps:$4 sm:$0xff]  }
 0x2a6   : > { %2514 = vmatprep.subr.bf16.mxu1 %v4616_v44  ;;  %v4670_v44 = vld [vmem:[%s5036_s12 + $0x1ec] ss:$16 sps:$4 sm:$0xff]  }
 0x2a7   : > { %2033 = vmatpush1.bf16.msra.mxu0 %v4521_v8 }
 0x2a8   : > { %2034 = vmatprep.subr.bf16.mxu0 %v4529_v10 }
 0x2a9   : > { %2515 = vmatpush1.bf16.msra.mxu1 %v4614_v43  ;;  %v4665_v43 = vld [vmem:[%s5036_s12 + $0x1c8] ss:$16 sps:$4 sm:$0xff]  }
 0x2aa   : > { %2516 = vmatprep.subr.bf16.mxu1 %v4619_v45  ;;  %v4668_v45 = vld [vmem:[%s5036_s12 + $0x1e8] ss:$16 sps:$4 sm:$0xff]  }
 0x2ab   : > { %2035 = vmatpush1.bf16.msra.mxu0 %v4527_v12 }
 0x2ac   : > { %2047 = vmatprep.subr.bf16.mxu0 %v4535_v14 }
 0x2ad   : > { %2517 = vmatpush1.bf16.msra.mxu1 %v4617_v46  ;;  %v2094_v46 = vld [vmem:[#allocation3] sm:$0xff] }
 0x2ae   : > { %2037 = vmatmul.mubr.bf16.vlgmr.msra.gmra.mrb[0].mxu0 %v1231_v17  ;;  %2518 = vmatprep.subr.bf16.mxu1 %v4622_v47  ;;  %v4626_v17 = vld [vmem:[%s5036_s12 + $0x28] ss:$16 sps:$4 sm:$0xff]   ;;  %v2095_v47 = vld [vmem:[#allocation3 + $0x8] sm:$0xff] }
 0x2af   : > { %2048 = vmatpush1.bf16.msra.mxu0 %v4533_v16  ;;  %2079 = vmatprep.mubr.bf16.mxu0 %v4910_v22  ;;  %v4628_v16 = vld [vmem:[%s5036_s12 + $0x2c] ss:$16 sps:$4 sm:$0xff]  }
 0x2b0   : > { %2049 = vmatprep.subr.bf16.mxu0 %v4541_v18  ;;  %v4631_v18 = vld [vmem:[%s5036_s12 + $0x4c] ss:$16 sps:$4 sm:$0xff]  }
 0x2b1   : > { %2519 = vmatpush1.bf16.msra.mxu1 %v4620_v48  ;;  %v4637_v22 = vld [vmem:[%s5036_s12 + $0x8c] ss:$16 sps:$4 sm:$0xff]  }
 0x2b2   : > { %2531 = vmatprep.subr.bf16.mxu1 %v4625_v49  ;;  %v2098_v49 = vld [vmem:[#allocation3 + $0x20] sm:$0xff] }
 0x2b3   : > { %2050 = vmatpush1.bf16.msra.mxu0 %v4539_v21  ;;  %v4632_v21 = vld [vmem:[%s5036_s12 + $0x68] ss:$16 sps:$4 sm:$0xff]  }
 0x2b4   : > { %2051 = vmatprep.subr.bf16.mxu0 %v4547_v23  ;;  %v4635_v23 = vld [vmem:[%s5036_s12 + $0x88] ss:$16 sps:$4 sm:$0xff]  }
 0x2b7   : > { %2052 = vmatpush1.bf16.msra.mxu0 %v4545_v26  ;;  %v4643_v26 = vld [vmem:[%s5036_s12 + $0xcc] ss:$16 sps:$4 sm:$0xff]  }
 0x2b8   : > { %2053 = vmatprep.subr.bf16.mxu0 %v4553_v27  ;;  %v4641_v27 = vld [vmem:[%s5036_s12 + $0xc8] ss:$16 sps:$4 sm:$0xff]  }
 0x2bb   : > { %2054 = vmatpush1.bf16.msra.mxu0 %v4551_v30  ;;  %v4649_v30 = vld [vmem:[%s5036_s12 + $0x10c] ss:$16 sps:$4 sm:$0xff]  }
 0x2bc   : > { %2055 = vmatprep.subr.bf16.mxu0 %v4559_v31  ;;  %v4647_v31 = vld [vmem:[%s5036_s12 + $0x108] ss:$16 sps:$4 sm:$0xff]  }
 0x2bf   : > { %2056 = vmatpush1.bf16.msra.mxu0 %v4557_v34  ;;  %v4655_v34 = vld [vmem:[%s5036_s12 + $0x14c] ss:$16 sps:$4 sm:$0xff]  }
 0x2c0   : > { %2057 = vmatprep.subr.bf16.mxu0 %v4565_v35  ;;  %v4653_v35 = vld [vmem:[%s5036_s12 + $0x148] ss:$16 sps:$4 sm:$0xff]  }
 0x2c3   : > { %2058 = vmatpush1.bf16.msra.mxu0 %v4563_v37  ;;  %v4656_v37 = vld [vmem:[%s5036_s12 + $0x168] ss:$16 sps:$4 sm:$0xff]  }
 0x2c4   : > { %2059 = vmatprep.subr.bf16.mxu0 %v4571_v38  ;;  %v4661_v38 = vld [vmem:[%s5036_s12 + $0x18c] ss:$16 sps:$4 sm:$0xff]  }
 0x2c7   : > { %2060 = vmatpush1.bf16.msra.mxu0 %v4569_v39  ;;  %v4659_v39 = vld [vmem:[%s5036_s12 + $0x188] ss:$16 sps:$4 sm:$0xff]  }
 0x2c8   : > { %2061 = vmatprep.subr.bf16.mxu0 %v4574_v40  ;;  %v4664_v40 = vld [vmem:[%s5036_s12 + $0x1ac] ss:$16 sps:$4 sm:$0xff]  }
 0x2cb   : > { %2062 = vmatpush1.bf16.msra.mxu0 %v4572_v41  ;;  %v4662_v41 = vld [vmem:[%s5036_s12 + $0x1a8] ss:$16 sps:$4 sm:$0xff]  }
 0x2ce   : > { %2080 = vmatmul.mubr.bf16.vlgmr.msra.gmra.mrb[0].mxu0 %v1233_v42  ;;  %v4667_v42 = vld [vmem:[%s5036_s12 + $0x1cc] ss:$16 sps:$4 sm:$0xff]  }
 0x347   : > { %v1952_v50 = vpop.f32.mrb[0].mxu1 }
 0x348   : > { %v1954_v51 = vpop.f32.mrb[1].mxu1  ;;  %v1953_v59 = vadd.f32 %v1952_v50, %v1351_v57 }
 0x349   : > { %v1956_v52 = vpop.f32.mrb[2].mxu1  ;;  %v1955_v60 = vadd.f32 %v1954_v51, %v1355_v58 }
 0x34a   : > { %v1958_v2 = vpop.f32.mrb[3].mxu1  ;;  %v1957_v62 = vadd.f32 %v1956_v52, %v1351_v57  ;;  %v2099_v52 = vld [vmem:[#allocation3 + $0x28] sm:$0xff] }
 0x34b   : > { %v1959_v1 = vadd.f32 %v1958_v2, %v1355_v58 }
 0x3a1   : > { %v2081_v61 = vpop.f32.mrb[0].mxu0 }
 0x3a2   : > { %v4271_v63 = vadd.f32 %v2081_v61, %v1953_v59  ;;  %v2083_v0 = vpop.f32.mrb[1].mxu0  ;;  %v2096_v59 = vld [vmem:[#allocation3 + $0x10] sm:$0xff] }
 0x3a3   : > { %v4273_v4 = vadd.f32 %v2083_v0, %v1955_v60  ;;  %v2085_v5 = vpop.f32.mrb[2].mxu0  ;;  %v2097_v60 = vld [vmem:[#allocation3 + $0x18] sm:$0xff] }
 0x3a4   : > { %v4275_v6 = vadd.f32 %v2085_v5, %v1957_v62  ;;  %v2087_v7 = vpop.f32.mrb[3].mxu0  ;;  %v2090_v9 = vmax.f32 %v4271_v63, 0.0  ;;  %v2100_v62 = vld [vmem:[#allocation3 + $0x30] sm:$0xff] }
 0x3a5   : > { %v4277_v8 = vadd.f32 %v2087_v7, %v1959_v1  ;;  %v2091_v11 = vmax.f32 %v4273_v4, 0.0  ;;  %v2101_v1 = vld [vmem:[#allocation3 + $0x38] sm:$0xff] }
 0x3a6   : > { %v2092_v10 = vmax.f32 %v4275_v6, 0.0 }
 0x3a7   : > { %v2093_v12 = vmax.f32 %v4277_v8, 0.0 }
 0x3a8   : > { %v5414_v13 = vpack.c.bf16 %v2092_v10, %v2090_v9 }
 0x3a9   : > { %v2103_v14 = vpack.c.bf16 %v2093_v12, %v2091_v11 }
 0x3ab   : > { %2520 = vmatprep.mubr.bf16.mxu1 %v2103_v14 }
 0x3ac   : > { %2521 = vmatmul.mubr.bf16.vlgmr.msra.gmra.mrb[4].mxu1 %v5414_v13 }
 0x3ad   : > { %2532 = vmatpush1.bf16.msra.mxu1 %v4623_v15  ;;  %2563 = vmatprep.mubr.bf16.mxu1 %v2103_v14  ;;  %v4911_v14 = vmov (!%p4096_p10), 0  }
 0x3ae   : > { %2533 = vmatprep.subr.bf16.mxu1 %v4628_v16  ;;  %2671 = vmatprep.mubr.bf16.mxu0 (!%p4096_p10), %v4911_v14 }
 0x3b1   : > { %2534 = vmatpush1.bf16.msra.mxu1 %v4626_v17 }
 0x3b2   : > { %2535 = vmatprep.subr.bf16.mxu1 %v4631_v18  ;;  %v4671_v18 = vld [vmem:[%s5500_s1] sm:$0xff] (!%p4096_p10)  }
 0x3b5   : > { %2536 = vmatpush1.bf16.msra.mxu1 %v4629_v19 }
 0x3b6   : > { %2537 = vmatprep.subr.bf16.mxu1 %v4634_v20 }
 0x3b9   : > { %2538 = vmatpush1.bf16.msra.mxu1 %v4632_v21 }
 0x3ba   : > { %2539 = vmatprep.subr.bf16.mxu1 %v4637_v22 }
 0x3bd   : > { %2540 = vmatpush1.bf16.msra.mxu1 %v4635_v23  ;;  %v2608_v23 = vld [vmem:[%s5507_s8] sm:$0xf] (!%p4096_p10) }
 0x3be   : > { %2541 = vmatprep.subr.bf16.mxu1 %v4640_v24  ;;  %v2620_v24 = vsub.s32 (!%p4096_p10), 2, %v5399_v54 }
 0x3c1   : > { %2542 = vmatpush1.bf16.msra.mxu1 %v4638_v25  ;;  %v2624_v25 = vsub.s32 (!%p4096_p10), 3, %v5399_v54 }
 0x3c2   : > { %2543 = vmatprep.subr.bf16.mxu1 %v4643_v26  ;;  %v2613_v26 = vrot.slane (!%p4096_p10), %v2608_v23, %v5402_v3 }
 0x3c5   : > { %2544 = vmatpush1.bf16.msra.mxu1 %v4641_v27  ;;  %v2617_v27 = vrot.slane (!%p4096_p10), %v2608_v23, %v5410_v56 }
 0x3c6   : > { %2545 = vmatprep.subr.bf16.mxu1 %v4646_v28  ;;  %v2621_v28 = vrot.slane (!%p4096_p10), %v2608_v23, %v2620_v24 }
 0x3c9   : > { %2546 = vmatpush1.bf16.msra.mxu1 %v4644_v29 }
 0x3ca   : > { %2547 = vmatprep.subr.bf16.mxu1 %v4649_v30  ;;  %v2625_v30 = vrot.slane (!%p4096_p10), %v2608_v23, %v2624_v25  ;;  %v4713_v23 = vld [vmem:[#allocation4 + $0xcc] ss:$16 sps:$4 sm:$0xff] (!%p4096_p10)  }
 0x3cd   : > { %2548 = vmatpush1.bf16.msra.mxu1 %v4647_v31 }
 0x3ce   : > { %2549 = vmatprep.subr.bf16.mxu1 %v4652_v32 }
 0x3d1   : > { %2550 = vmatpush1.bf16.msra.mxu1 %v4650_v33 }
 0x3d2   : > { %2551 = vmatprep.subr.bf16.mxu1 %v4655_v34 }
 0x3d5   : > { %2552 = vmatpush1.bf16.msra.mxu1 %v4653_v35 }
 0x3d6   : > { %2553 = vmatprep.subr.bf16.mxu1 %v4658_v36 }
 0x3d9   : > { %2554 = vmatpush1.bf16.msra.mxu1 %v4656_v37 }
 0x3da   : > { %2555 = vmatprep.subr.bf16.mxu1 %v4661_v38 }
 0x3dd   : > { %2556 = vmatpush1.bf16.msra.mxu1 %v4659_v39 }
 0x3de   : > { %2557 = vmatprep.subr.bf16.mxu1 %v4664_v40 }
 0x3e1   : > { %2558 = vmatpush1.bf16.msra.mxu1 %v4662_v41 }
 0x3e2   : > { %2559 = vmatprep.subr.bf16.mxu1 %v4667_v42 }
 0x3e5   : > { %2560 = vmatpush1.bf16.msra.mxu1 %v4665_v43 }
 0x3e6   : > { %2561 = vmatprep.subr.bf16.mxu1 %v4670_v44 }
 0x3e9   : > { %2562 = vmatpush1.bf16.msra.mxu1 %v4668_v45 }
 0x3ec   : > { %2564 = vmatmul.mubr.bf16.vlgmr.msra.gmra.mrb[8].mxu1 %v5414_v13 }
 0x3ed   : > { %2714 = vmatprep.mubr.bf16.mxu1 (!%p4096_p10), %v4911_v14 }
 0x47f   : > { %v2522_v48 = vpop.f32.mrb[4].mxu1 }
 0x480   : > { %v2574_v50 = vadd.f32 %v2522_v48, %v2094_v46  ;;  %v2524_v51 = vpop.f32.mrb[5].mxu1 }
 0x481   : > { %v2575_v2 = vadd.f32 %v2524_v51, %v2095_v47  ;;  %v2526_v53 = vpop.f32.mrb[6].mxu1 }
 0x482   : > { %2582 = vst [vmem:[#allocation3] sm:$0xff] %v2574_v50  ;;  %v2578_v55 = vadd.f32 %v2526_v53, %v2098_v49  ;;  %v2528_v57 = vpop.f32.mrb[7].mxu1 }
 0x483   : > { %2583 = vst [vmem:[#allocation3 + $0x8] sm:$0xff] %v2575_v2  ;;  %v2579_v58 = vadd.f32 %v2528_v57, %v2099_v52  ;;  %v4674_v57 = vld [vmem:[#allocation4 + $0x4] ss:$16 sps:$4 sm:$0xff] (!%p4096_p10)  }
 0x484   : > { %2586 = vst [vmem:[#allocation3 + $0x20] sm:$0xff] %v2578_v55 }
 0x485   : > { %2587 = vst [vmem:[#allocation3 + $0x28] sm:$0xff] %v2579_v58 }
 0x489   : > { %v2596_v11 = vld [vmem:[#allocation3] sm:$0xff] (!%p4096_p10) }
 0x48a   : > { %v2597_v9 = vld [vmem:[#allocation3 + $0x8] sm:$0xff] (!%p4096_p10) }
 0x48b   : > { %v2600_v13 = vld [vmem:[#allocation3 + $0x20] sm:$0xff] (!%p4096_p10) }
 0x48c   : > { %v2601_v10 = vld [vmem:[#allocation3 + $0x28] sm:$0xff] (!%p4096_p10)  ;;  %v2604_v15 = vpack.c.bf16 (!%p4096_p10), %v2600_v13, %v2596_v11  ;;  %v4698_v13 = vld [vmem:[#allocation4 + $0x84] ss:$16 sps:$4 sm:$0xff] (!%p4096_p10)  }
 0x48d   : > { %v2605_v12 = vpack.c.bf16 (!%p4096_p10), %v2601_v10, %v2597_v9  ;;  %v4692_v9 = vld [vmem:[#allocation4 + $0x64] ss:$16 sps:$4 sm:$0xff] (!%p4096_p10)   ;;  %v4687_v10 = vld [vmem:[#allocation4 + $0x48] ss:$16 sps:$4 sm:$0xff] (!%p4096_p10)   ;;  %v4695_v11 = vld [vmem:[#allocation4 + $0x6c] ss:$16 sps:$4 sm:$0xff] (!%p4096_p10)  }
 0x48f   : > { %2639 = vmatprep.subr.bf16.mxu0 (!%p4096_p10), %v2605_v12  ;;  %v4690_v12 = vld [vmem:[#allocation4 + $0x60] ss:$16 sps:$4 sm:$0xff] (!%p4096_p10)  }
 0x490   : > { %2640 = vmatpush1.bf16.msra.mxu0 (!%p4096_p10), %v2604_v15  ;;  %v4701_v15 = vld [vmem:[#allocation4 + $0x8c] ss:$16 sps:$4 sm:$0xff] (!%p4096_p10)  }
 0x493   : > { %4098 = vmatmul.mubr.msk.bf16.vlgmr.msra.gmra.mrb[0].mxu0 (!%p4096_p10), %vm2635_vm2, %v4671_v18 }
 0x494   : > { %2773 = vmatprep.mubr.bf16.mxu0 (!%p4096_p10), %v4911_v14 }
 0x4bf   : > { %v2565_v61 = vpop.f32.mrb[8].mxu1  ;;  %2593 = sbr.rel (%p4096_p10) target bundleno = 1896 (0x768), region = 76 }
 0x4c0   : > { %v2576_v63 = vadd.f32 %v2565_v61, %v2096_v59  ;;  %v2567_v0 = vpop.f32.mrb[9].mxu1  ;;  %v2737_v61 = vld [vmem:[%s5501_s2] sm:$0xf] (!%p4096_p10) }
 0x4c1   : > { %v2577_v4 = vadd.f32 %v2567_v0, %v2097_v60  ;;  %v2569_v5 = vpop.f32.mrb[10].mxu1  ;;  %v4677_v60 = vld [vmem:[#allocation4 + $0xc] ss:$16 sps:$4 sm:$0xff] (!%p4096_p10)   ;;  %v4675_v0 = vld [vmem:[#allocation4 + $0x8] ss:$16 sps:$4 sm:$0xff] (!%p4096_p10)  }
 0x4c2   : > { %2584 = vst [vmem:[#allocation3 + $0x10] sm:$0xff] %v2576_v63  ;;  %v2580_v6 = vadd.f32 %v2569_v5, %v2100_v62  ;;  %v2571_v7 = vpop.f32.mrb[11].mxu1  ;;  %v4672_v62 = vld [vmem:[#allocation4] ss:$16 sps:$4 sm:$0xff] (!%p4096_p10)   ;;  %v4680_v63 = vld [vmem:[#allocation4 + $0x24] ss:$16 sps:$4 sm:$0xff] (!%p4096_p10)  }
 0x4c3   : > { %2585 = vst [vmem:[#allocation3 + $0x18] sm:$0xff] %v2577_v4  ;;  %v2581_v8 = vadd.f32 %v2571_v7, %v2101_v1  ;;  %v4683_v1 = vld [vmem:[#allocation4 + $0x2c] ss:$16 sps:$4 sm:$0xff] (!%p4096_p10)   ;;  %v4678_v4 = vld [vmem:[#allocation4 + $0x20] ss:$16 sps:$4 sm:$0xff] (!%p4096_p10)  }
 0x4c4   : > { %2588 = vst [vmem:[#allocation3 + $0x30] sm:$0xff] %v2580_v6  ;;  %v4686_v5 = vld [vmem:[#allocation4 + $0x44] ss:$16 sps:$4 sm:$0xff] (!%p4096_p10)   ;;  %v4681_v6 = vld [vmem:[#allocation4 + $0x28] ss:$16 sps:$4 sm:$0xff] (!%p4096_p10)  }
 0x4c5   : > { %2589 = vst [vmem:[#allocation3 + $0x38] sm:$0xff] %v2581_v8  ;;  %v4689_v7 = vld [vmem:[#allocation4 + $0x4c] ss:$16 sps:$4 sm:$0xff] (!%p4096_p10)   ;;  %v4684_v8 = vld [vmem:[#allocation4 + $0x40] ss:$16 sps:$4 sm:$0xff] (!%p4096_p10)  }
 0x4c9   : > { %v2598_v20 = vld [vmem:[#allocation3 + $0x10] sm:$0xff] }
 0x4ca   : > { %v2599_v16 = vld [vmem:[#allocation3 + $0x18] sm:$0xff] }
 0x4cb   : > { %v2602_v21 = vld [vmem:[#allocation3 + $0x30] sm:$0xff] }
 0x4cc   : > { %v2603_v17 = vld [vmem:[#allocation3 + $0x38] sm:$0xff]  ;;  %v2606_v22 = vpack.c.bf16 %v2602_v21, %v2598_v20  ;;  %v4702_v20 = vld [vmem:[#allocation4 + $0xa0] ss:$16 sps:$4 sm:$0xff]   ;;  %v4710_v21 = vld [vmem:[#allocation4 + $0xc4] ss:$16 sps:$4 sm:$0xff]  }
 0x4cd   : > { %v2607_v19 = vpack.c.bf16 %v2603_v17, %v2599_v16  ;;  %v4696_v16 = vld [vmem:[#allocation4 + $0x80] ss:$16 sps:$4 sm:$0xff]   ;;  %v4704_v17 = vld [vmem:[#allocation4 + $0xa4] ss:$16 sps:$4 sm:$0xff]  }
 0x4cf   : > { %2682 = vmatprep.subr.bf16.mxu1 %v2607_v19  ;;  %v4707_v19 = vld [vmem:[#allocation4 + $0xac] ss:$16 sps:$4 sm:$0xff]  }
 0x4d0   : > { %2683 = vmatpush1.bf16.msra.mxu1 %v2606_v22  ;;  %v4705_v22 = vld [vmem:[#allocation4 + $0xa8] ss:$16 sps:$4 sm:$0xff]  }
 0x4d3   : > { %4099 = vmatmul.mubr.msk.bf16.vlgmr.msra.gmra.mrb[0].mxu1 %vm2635_vm2, %v4671_v18  ;;  %v4699_v18 = vld [vmem:[#allocation4 + $0x88] ss:$16 sps:$4 sm:$0xff]  }
 0x4d4   : > { %2814 = vmatprep.mubr.bf16.mxu1 %v4911_v14  ;;  %v4693_v14 = vld [vmem:[#allocation4 + $0x68] ss:$16 sps:$4 sm:$0xff]  }
 0x566   : > { %v2673_v29 = vpop.f32.mrb[0].mxu0 }
 0x567   : > { %v2674_v31 = vadd.f32 %v2673_v29, %v2613_v26  ;;  %v2675_v32 = vpop.f32.mrb[1].mxu0  ;;  %v4719_v29 = vld [vmem:[#allocation4 + $0xec] ss:$16 sps:$4 sm:$0xff]  }
 0x568   : > { %v2676_v33 = vadd.f32 %v2675_v32, %v2617_v27  ;;  %v2677_v34 = vpop.f32.mrb[2].mxu0  ;;  %v4717_v32 = vld [vmem:[#allocation4 + $0xe8] ss:$16 sps:$4 sm:$0xff]  }
 0x569   : > { %v2678_v36 = vadd.f32 %v2677_v34, %v2613_v26  ;;  %v2679_v37 = vpop.f32.mrb[3].mxu0  ;;  %v2725_v43 = vmax.f32 %v2674_v31, 0.0  ;;  %v4708_v26 = vld [vmem:[#allocation4 + $0xc0] ss:$16 sps:$4 sm:$0xff]   ;;  %v4722_v31 = vld [vmem:[#allocation4 + $0x104] ss:$16 sps:$4 sm:$0xff]  }
 0x56a   : > { %v2680_v40 = vadd.f32 %v2679_v37, %v2617_v27  ;;  %v2726_v48 = vmax.f32 %v2676_v33, 0.0  ;;  %v4716_v27 = vld [vmem:[#allocation4 + $0xe4] ss:$16 sps:$4 sm:$0xff]   ;;  %v4725_v33 = vld [vmem:[#allocation4 + $0x10c] ss:$16 sps:$4 sm:$0xff]  }
 0x56b   : > { %v2729_v44 = vmax.f32 %v2678_v36, 0.0  ;;  %v4720_v34 = vld [vmem:[#allocation4 + $0x100] ss:$16 sps:$4 sm:$0xff]   ;;  %v4723_v36 = vld [vmem:[#allocation4 + $0x108] ss:$16 sps:$4 sm:$0xff]  }
 0x56c   : > { %v2730_v49 = vmax.f32 %v2680_v40, 0.0  ;;  %v4731_v37 = vld [vmem:[#allocation4 + $0x12c] ss:$16 sps:$4 sm:$0xff]   ;;  %v4729_v40 = vld [vmem:[#allocation4 + $0x128] ss:$16 sps:$4 sm:$0xff]  }
 0x56d   : > { %v2733_v52 = vpack.c.bf16 %v2729_v44, %v2725_v43  ;;  %v4740_v43 = vld [vmem:[#allocation4 + $0x164] ss:$16 sps:$4 sm:$0xff]   ;;  %v4735_v44 = vld [vmem:[#allocation4 + $0x148] ss:$16 sps:$4 sm:$0xff]  }
 0x56e   : > { %v2734_v53 = vpack.c.bf16 %v2730_v49, %v2726_v48  ;;  %v4741_v48 = vld [vmem:[#allocation4 + $0x168] ss:$16 sps:$4 sm:$0xff]   ;;  %v4749_v49 = vld [vmem:[#allocation4 + $0x18c] ss:$16 sps:$4 sm:$0xff]  }
 0x570   : > { %2741 = vmatprep.subr.bf16.mxu0 %v2734_v53  ;;  %v4750_v53 = vld [vmem:[#allocation4 + $0x1a0] ss:$16 sps:$4 sm:$0xff]  }
 0x571   : > { %2742 = vmatpush1.bf16.msra.mxu0 %v2733_v52  ;;  %v4747_v52 = vld [vmem:[#allocation4 + $0x188] ss:$16 sps:$4 sm:$0xff]  }
 0x572   : > { %3617 = vmatprep.subr.bf16.mxu0 %v4674_v57  ;;  %v4753_v57 = vld [vmem:[#allocation4 + $0x1a8] ss:$16 sps:$4 sm:$0xff]  }
 0x574   : > { %4100 = vmatmul.mubr.msk.bf16.vlgmr.msra.gmra.mrb[4].mxu0 %vm2635_vm2, %v2737_v61 }
 0x575   : > { %3618 = vmatpush1.bf16.msra.mxu0 %v4672_v62  ;;  %v4767_v62 = vld [vmem:[#allocation4 + $0x1ec] ss:$16 sps:$4 sm:$0xff]  }
 0x576   : > { %3619 = vmatprep.subr.bf16.mxu0 %v4680_v63  ;;  %v4762_v63 = vld [vmem:[#allocation4 + $0x1e0] ss:$16 sps:$4 sm:$0xff]  }
 0x579   : > { %3620 = vmatpush1.bf16.msra.mxu0 %v4678_v4  ;;  %v4773_v4 = vld [vmem:[#allocation4 + $0x20c] ss:$16 sps:$4 sm:$0xff]  }
 0x57a   : > { %3621 = vmatprep.subr.bf16.mxu0 %v4686_v5 }
 0x57d   : > { %3622 = vmatpush1.bf16.msra.mxu0 %v4684_v8 }
 0x57e   : > { %3623 = vmatprep.subr.bf16.mxu0 %v4692_v9  ;;  %v4768_v9 = vld [vmem:[#allocation4 + $0x200] ss:$16 sps:$4 sm:$0xff]  }
 0x581   : > { %3624 = vmatpush1.bf16.msra.mxu0 %v4690_v12 }
 0x582   : > { %3625 = vmatprep.subr.bf16.mxu0 %v4698_v13 }
 0x585   : > { %3626 = vmatpush1.bf16.msra.mxu0 %v4696_v16 }
 0x586   : > { %3627 = vmatprep.subr.bf16.mxu0 %v4704_v17 }
 0x589   : > { %3628 = vmatpush1.bf16.msra.mxu0 %v4702_v20  ;;  %v4774_v20 = vld [vmem:[#allocation4 + $0x220] ss:$16 sps:$4 sm:$0xff]  }
 0x58a   : > { %3629 = vmatprep.subr.bf16.mxu0 %v4710_v21  ;;  %v4777_v21 = vld [vmem:[#allocation4 + $0x228] ss:$16 sps:$4 sm:$0xff]  }
 0x58d   : > { %3630 = vmatpush1.bf16.msra.mxu0 %v4708_v26  ;;  %v4780_v26 = vld [vmem:[#allocation4 + $0x240] ss:$16 sps:$4 sm:$0xff]  }
 0x58e   : > { %3631 = vmatprep.subr.bf16.mxu0 %v4716_v27  ;;  %v4783_v27 = vld [vmem:[#allocation4 + $0x248] ss:$16 sps:$4 sm:$0xff]  }
 0x5a6   : > { %v2716_v35 = vpop.f32.mrb[0].mxu1 }
 0x5a7   : > { %v2717_v38 = vadd.f32 %v2716_v35, %v2621_v28  ;;  %v2718_v39 = vpop.f32.mrb[1].mxu1  ;;  %v4728_v35 = vld [vmem:[#allocation4 + $0x124] ss:$16 sps:$4 sm:$0xff]  }
 0x5a8   : > { %v2719_v41 = vadd.f32 %v2718_v39, %v2625_v30  ;;  %v2720_v42 = vpop.f32.mrb[2].mxu1  ;;  %v4734_v39 = vld [vmem:[#allocation4 + $0x144] ss:$16 sps:$4 sm:$0xff]  }
 0x5a9   : > { %v2727_v45 = vmax.f32 %v2717_v38, 0.0  ;;  %v2721_v46 = vadd.f32 %v2720_v42, %v2621_v28  ;;  %v2722_v47 = vpop.f32.mrb[3].mxu1  ;;  %v4711_v28 = vld [vmem:[#allocation4 + $0xc8] ss:$16 sps:$4 sm:$0xff]   ;;  %v4726_v38 = vld [vmem:[#allocation4 + $0x120] ss:$16 sps:$4 sm:$0xff]  }
 0x5aa   : > { %v2728_v50 = vmax.f32 %v2719_v41, 0.0  ;;  %v2723_v51 = vadd.f32 %v2722_v47, %v2625_v30  ;;  %v4714_v30 = vld [vmem:[#allocation4 + $0xe0] ss:$16 sps:$4 sm:$0xff]   ;;  %v4737_v41 = vld [vmem:[#allocation4 + $0x14c] ss:$16 sps:$4 sm:$0xff]  }
 0x5ab   : > { %v2731_v2 = vmax.f32 %v2721_v46, 0.0  ;;  %3632 = vmatpush1.bf16.msra.mxu0 %v4714_v30  ;;  %v4732_v42 = vld [vmem:[#allocation4 + $0x140] ss:$16 sps:$4 sm:$0xff]   ;;  %v4746_v47 = vld [vmem:[#allocation4 + $0x184] ss:$16 sps:$4 sm:$0xff]  }
 0x5ac   : > { %v2732_v55 = vmax.f32 %v2723_v51, 0.0  ;;  %3633 = vmatprep.subr.bf16.mxu0 %v4722_v31  ;;  %v4738_v46 = vld [vmem:[#allocation4 + $0x160] ss:$16 sps:$4 sm:$0xff]   ;;  %v4752_v51 = vld [vmem:[#allocation4 + $0x1a4] ss:$16 sps:$4 sm:$0xff]  }
 0x5ad   : > { %v2735_v58 = vpack.c.bf16 %v2731_v2, %v2727_v45  ;;  %v4743_v45 = vld [vmem:[#allocation4 + $0x16c] ss:$16 sps:$4 sm:$0xff]   ;;  %v4786_v30 = vld [vmem:[#allocation4 + $0x260] ss:$16 sps:$4 sm:$0xff]   ;;  %v4789_v31 = vld [vmem:[#allocation4 + $0x268] ss:$16 sps:$4 sm:$0xff]  }
 0x5ae   : > { %v2736_v59 = vpack.c.bf16 %v2732_v55, %v2728_v50  ;;  %v4744_v50 = vld [vmem:[#allocation4 + $0x180] ss:$16 sps:$4 sm:$0xff]   ;;  %v4755_v2 = vld [vmem:[#allocation4 + $0x1ac] ss:$16 sps:$4 sm:$0xff]   ;;  %v4758_v55 = vld [vmem:[#allocation4 + $0x1c4] ss:$16 sps:$4 sm:$0xff]  }
 0x5af   : > { %3634 = vmatpush1.bf16.msra.mxu0 %v4720_v34  ;;  %v4792_v34 = vld [vmem:[#allocation4 + $0x280] ss:$16 sps:$4 sm:$0xff]  }
 0x5b0   : > { %2782 = vmatprep.subr.bf16.mxu1 %v2736_v59  ;;  %3635 = vmatprep.subr.bf16.mxu0 %v4728_v35  ;;  %v4756_v59 = vld [vmem:[#allocation4 + $0x1c0] ss:$16 sps:$4 sm:$0xff]   ;;  %v4795_v35 = vld [vmem:[#allocation4 + $0x288] ss:$16 sps:$4 sm:$0xff]  }
 0x5b1   : > { %2783 = vmatpush1.bf16.msra.mxu1 %v2735_v58  ;;  %v4761_v58 = vld [vmem:[#allocation4 + $0x1cc] ss:$16 sps:$4 sm:$0xff]  }
 0x5b2   : > { %3699 = vmatprep.subr.bf16.mxu1 %v4677_v60  ;;  %v4759_v60 = vld [vmem:[#allocation4 + $0x1c8] ss:$16 sps:$4 sm:$0xff]  }
 0x5b3   : > { %3636 = vmatpush1.bf16.msra.mxu0 %v4726_v38  ;;  %v4798_v38 = vld [vmem:[#allocation4 + $0x2a0] ss:$16 sps:$4 sm:$0xff]  }
 0x5b4   : > { %4101 = vmatmul.mubr.msk.bf16.vlgmr.msra.gmra.mrb[4].mxu1 %vm2635_vm2, %v2737_v61  ;;  %3637 = vmatprep.subr.bf16.mxu0 %v4734_v39  ;;  %v4764_v61 = vld [vmem:[#allocation4 + $0x1e4] ss:$16 sps:$4 sm:$0xff]   ;;  %v4801_v39 = vld [vmem:[#allocation4 + $0x2a8] ss:$16 sps:$4 sm:$0xff]  }
 0x5b5   : > { %3700 = vmatpush1.bf16.msra.mxu1 %v4675_v0  ;;  %v4765_v0 = vld [vmem:[#allocation4 + $0x1e8] ss:$16 sps:$4 sm:$0xff]  }
 0x5b6   : > { %3701 = vmatprep.subr.bf16.mxu1 %v4683_v1  ;;  %v4770_v1 = vld [vmem:[#allocation4 + $0x204] ss:$16 sps:$4 sm:$0xff]  }
 0x5b7   : > { %3638 = vmatpush1.bf16.msra.mxu0 %v4732_v42  ;;  %v4804_v42 = vld [vmem:[#allocation4 + $0x2c0] ss:$16 sps:$4 sm:$0xff]  }
 0x5b8   : > { %3639 = vmatprep.subr.bf16.mxu0 %v4740_v43  ;;  %v4807_v43 = vld [vmem:[#allocation4 + $0x2c8] ss:$16 sps:$4 sm:$0xff]  }
 0x5b9   : > { %3702 = vmatpush1.bf16.msra.mxu1 %v4681_v6 }
 0x5ba   : > { %3703 = vmatprep.subr.bf16.mxu1 %v4689_v7 }
 0x5bb   : > { %3640 = vmatpush1.bf16.msra.mxu0 %v4738_v46  ;;  %v4810_v46 = vld [vmem:[#allocation4 + $0x2e0] ss:$16 sps:$4 sm:$0xff]  }
 0x5bc   : > { %3641 = vmatprep.subr.bf16.mxu0 %v4746_v47  ;;  %v4813_v47 = vld [vmem:[#allocation4 + $0x2e8] ss:$16 sps:$4 sm:$0xff]  }
 0x5bd   : > { %3704 = vmatpush1.bf16.msra.mxu1 %v4687_v10  ;;  %v4771_v10 = vld [vmem:[#allocation4 + $0x208] ss:$16 sps:$4 sm:$0xff]  }
 0x5be   : > { %3705 = vmatprep.subr.bf16.mxu1 %v4695_v11 }
 0x5bf   : > { %3642 = vmatpush1.bf16.msra.mxu0 %v4744_v50  ;;  %v4816_v50 = vld [vmem:[#allocation4 + $0x300] ss:$16 sps:$4 sm:$0xff]  }
 0x5c0   : > { %3643 = vmatprep.subr.bf16.mxu0 %v4752_v51  ;;  %v4819_v51 = vld [vmem:[#allocation4 + $0x308] ss:$16 sps:$4 sm:$0xff]  }
 0x5c1   : > { %3706 = vmatpush1.bf16.msra.mxu1 %v4693_v14  ;;  %v4776_v14 = vld [vmem:[#allocation4 + $0x224] ss:$16 sps:$4 sm:$0xff]  }
 0x5c2   : > { %3707 = vmatprep.subr.bf16.mxu1 %v4701_v15  ;;  %v4779_v15 = vld [vmem:[#allocation4 + $0x22c] ss:$16 sps:$4 sm:$0xff]  }
 0x5c3   : > { %3644 = vmatpush1.bf16.msra.mxu0 %v4750_v53  ;;  %v4822_v53 = vld [vmem:[#allocation4 + $0x320] ss:$16 sps:$4 sm:$0xff]  }
 0x5c4   : > { %3645 = vmatprep.subr.bf16.mxu0 %v4758_v55  ;;  %v4825_v55 = vld [vmem:[#allocation4 + $0x328] ss:$16 sps:$4 sm:$0xff]  }
 0x5c5   : > { %3708 = vmatpush1.bf16.msra.mxu1 %v4699_v18 }
 0x5c6   : > { %3709 = vmatprep.subr.bf16.mxu1 %v4707_v19 }
 0x5c7   : > { %3646 = vmatpush1.bf16.msra.mxu0 %v4756_v59  ;;  %v4828_v59 = vld [vmem:[#allocation4 + $0x340] ss:$16 sps:$4 sm:$0xff]  }
 0x5c8   : > { %3647 = vmatprep.subr.bf16.mxu0 %v4764_v61  ;;  %v4836_v61 = vld [vmem:[#allocation4 + $0x364] ss:$16 sps:$4 sm:$0xff]  }
 0x5c9   : > { %3710 = vmatpush1.bf16.msra.mxu1 %v4705_v22  ;;  %v4782_v22 = vld [vmem:[#allocation4 + $0x244] ss:$16 sps:$4 sm:$0xff]  }
 0x5ca   : > { %3711 = vmatprep.subr.bf16.mxu1 %v4713_v23  ;;  %v4785_v23 = vld [vmem:[#allocation4 + $0x24c] ss:$16 sps:$4 sm:$0xff]  }
 0x5cb   : > { %3648 = vmatpush1.bf16.msra.mxu0 %v4762_v63  ;;  %v4834_v63 = vld [vmem:[#allocation4 + $0x360] ss:$16 sps:$4 sm:$0xff]  }
 0x5cc   : > { %3658 = vmatprep.subr.bf16.mxu0 %v4770_v1  ;;  %v4842_v1 = vld [vmem:[#allocation4 + $0x384] ss:$16 sps:$4 sm:$0xff]  }
 0x5cd   : > { %3712 = vmatpush1.bf16.msra.mxu1 %v4711_v28  ;;  %v4788_v28 = vld [vmem:[#allocation4 + $0x264] ss:$16 sps:$4 sm:$0xff]  }
 0x5ce   : > { %3713 = vmatprep.subr.bf16.mxu1 %v4719_v29  ;;  %v4791_v29 = vld [vmem:[#allocation4 + $0x26c] ss:$16 sps:$4 sm:$0xff]  }
 0x5d1   : > { %3714 = vmatpush1.bf16.msra.mxu1 %v4717_v32  ;;  %v4794_v32 = vld [vmem:[#allocation4 + $0x284] ss:$16 sps:$4 sm:$0xff]  }
 0x5d2   : > { %3715 = vmatprep.subr.bf16.mxu1 %v4725_v33  ;;  %v4797_v33 = vld [vmem:[#allocation4 + $0x28c] ss:$16 sps:$4 sm:$0xff]  }
 0x5d5   : > { %3716 = vmatpush1.bf16.msra.mxu1 %v4723_v36  ;;  %v4800_v36 = vld [vmem:[#allocation4 + $0x2a4] ss:$16 sps:$4 sm:$0xff]  }
 0x5d6   : > { %3717 = vmatprep.subr.bf16.mxu1 %v4731_v37  ;;  %v4803_v37 = vld [vmem:[#allocation4 + $0x2ac] ss:$16 sps:$4 sm:$0xff]  }
 0x5d9   : > { %3718 = vmatpush1.bf16.msra.mxu1 %v4729_v40  ;;  %v4806_v40 = vld [vmem:[#allocation4 + $0x2c4] ss:$16 sps:$4 sm:$0xff]  }
 0x5da   : > { %3719 = vmatprep.subr.bf16.mxu1 %v4737_v41  ;;  %v4809_v41 = vld [vmem:[#allocation4 + $0x2cc] ss:$16 sps:$4 sm:$0xff]  }
 0x5dd   : > { %3720 = vmatpush1.bf16.msra.mxu1 %v4735_v44  ;;  %v4812_v44 = vld [vmem:[#allocation4 + $0x2e4] ss:$16 sps:$4 sm:$0xff]  }
 0x5de   : > { %3721 = vmatprep.subr.bf16.mxu1 %v4743_v45  ;;  %v4815_v45 = vld [vmem:[#allocation4 + $0x2ec] ss:$16 sps:$4 sm:$0xff]  }
 0x5e1   : > { %3722 = vmatpush1.bf16.msra.mxu1 %v4741_v48  ;;  %v4818_v48 = vld [vmem:[#allocation4 + $0x304] ss:$16 sps:$4 sm:$0xff]  }
 0x5e2   : > { %3723 = vmatprep.subr.bf16.mxu1 %v4749_v49  ;;  %v4821_v49 = vld [vmem:[#allocation4 + $0x30c] ss:$16 sps:$4 sm:$0xff]  }
 0x5e5   : > { %3724 = vmatpush1.bf16.msra.mxu1 %v4747_v52  ;;  %v4824_v52 = vld [vmem:[#allocation4 + $0x324] ss:$16 sps:$4 sm:$0xff]  }
 0x5e6   : > { %3725 = vmatprep.subr.bf16.mxu1 %v4755_v2  ;;  %v4827_v2 = vld [vmem:[#allocation4 + $0x32c] ss:$16 sps:$4 sm:$0xff]  }
 0x5e9   : > { %3726 = vmatpush1.bf16.msra.mxu1 %v4753_v57  ;;  %v4830_v57 = vld [vmem:[#allocation4 + $0x344] ss:$16 sps:$4 sm:$0xff]  }
 0x5ea   : > { %3727 = vmatprep.subr.bf16.mxu1 %v4761_v58  ;;  %v4833_v58 = vld [vmem:[#allocation4 + $0x34c] ss:$16 sps:$4 sm:$0xff]  }
 0x5ed   : > { %3728 = vmatpush1.bf16.msra.mxu1 %v4759_v60  ;;  %v4831_v60 = vld [vmem:[#allocation4 + $0x348] ss:$16 sps:$4 sm:$0xff]  }
 0x5ee   : > { %3729 = vmatprep.subr.bf16.mxu1 %v4767_v62  ;;  %v4839_v62 = vld [vmem:[#allocation4 + $0x36c] ss:$16 sps:$4 sm:$0xff]  }
 0x5f1   : > { %3730 = vmatpush1.bf16.msra.mxu1 %v4765_v0  ;;  %v4837_v0 = vld [vmem:[#allocation4 + $0x368] ss:$16 sps:$4 sm:$0xff]  }
 0x5f2   : > { %3740 = vmatprep.subr.bf16.mxu1 %v4773_v4  ;;  %v4845_v4 = vld [vmem:[#allocation4 + $0x38c] ss:$16 sps:$4 sm:$0xff]  }
 0x647   : > { %v2775_v5 = vpop.f32.mrb[4].mxu0 }
 0x648   : > { %v2777_v6 = vpop.f32.mrb[5].mxu0  ;;  %v2823_v12 = vpack.c.bf16 %v2775_v5, %v2775_v5  ;;  %v4840_v5 = vld [vmem:[#allocation4 + $0x380] ss:$16 sps:$4 sm:$0xff]  }
 0x649   : > { %v2824_v7 = vpack.c.bf16 %v2777_v6, %v2777_v6  ;;  %v2779_v8 = vpop.f32.mrb[6].mxu0  ;;  %v4843_v6 = vld [vmem:[#allocation4 + $0x388] ss:$16 sps:$4 sm:$0xff]  }
 0x64a   : > { %v2780_v13 = vpop.f32.mrb[7].mxu0  ;;  %v4851_v8 = vld [vmem:[#allocation4 + $0x3ac] ss:$16 sps:$4 sm:$0xff]  }
 0x64b   : > { %3649 = vmatprep.mubr.bf16.mxu0 %v2824_v7  ;;  %3731 = vmatprep.mubr.bf16.mxu1 %v2824_v7  ;;  %v4848_v7 = vld [vmem:[#allocation4 + $0x3a4] ss:$16 sps:$4 sm:$0xff]   ;;  %v4857_v13 = vld [vmem:[#allocation4 + $0x3cc] ss:$16 sps:$4 sm:$0xff]  }
 0x64c   : > { %3650 = vmatmul.mubr.bf16.vlgmr.msra.gmra.mrb[8].mxu0 %v2823_v12  ;;  %3732 = vmatmul.mubr.bf16.vlgmr.msra.gmra.mrb[8].mxu1 %v2823_v12  ;;  %v4854_v12 = vld [vmem:[#allocation4 + $0x3c4] ss:$16 sps:$4 sm:$0xff]  }
 0x64d   : > { %3659 = vmatpush1.bf16.msra.mxu0 %v4768_v9  ;;  %3741 = vmatpush1.bf16.msra.mxu1 %v4771_v10  ;;  %v4846_v9 = vld [vmem:[#allocation4 + $0x3a0] ss:$16 sps:$4 sm:$0xff]   ;;  %v4849_v10 = vld [vmem:[#allocation4 + $0x3a8] ss:$16 sps:$4 sm:$0xff]  }
 0x64e   : > { %3660 = vmatprep.subr.bf16.mxu0 %v4776_v14  ;;  %3742 = vmatprep.subr.bf16.mxu1 %v4779_v15  ;;  %v4852_v14 = vld [vmem:[#allocation4 + $0x3c0] ss:$16 sps:$4 sm:$0xff]   ;;  %v4855_v15 = vld [vmem:[#allocation4 + $0x3c8] ss:$16 sps:$4 sm:$0xff]  }
 0x651   : > { %3661 = vmatpush1.bf16.msra.mxu0 %v4774_v20  ;;  %3743 = vmatpush1.bf16.msra.mxu1 %v4777_v21  ;;  %v2955_v21 = vld [vmem:[%s5509_s10] sm:$0xf] }
 0x652   : > { %3662 = vmatprep.subr.bf16.mxu0 %v4782_v22  ;;  %3744 = vmatprep.subr.bf16.mxu1 %v4785_v23  ;;  %v2960_v22 = vrot.slane %v2955_v21, %v5402_v3  ;;  %v2968_v23 = vrot.slane %v2955_v21, %v2620_v24 }
 0x655   : > { %3663 = vmatpush1.bf16.msra.mxu0 %v4780_v26  ;;  %3745 = vmatpush1.bf16.msra.mxu1 %v4783_v27  ;;  %v2964_v26 = vrot.slane %v2955_v21, %v5410_v56  ;;  %v2972_v27 = vrot.slane %v2955_v21, %v2624_v25 }
 0x656   : > { %3664 = vmatprep.subr.bf16.mxu0 %v4788_v28  ;;  %3746 = vmatprep.subr.bf16.mxu1 %v4791_v29 }
 0x659   : > { %3665 = vmatpush1.bf16.msra.mxu0 %v4786_v30  ;;  %3747 = vmatpush1.bf16.msra.mxu1 %v4789_v31 }
 0x65a   : > { %3666 = vmatprep.subr.bf16.mxu0 %v4794_v32  ;;  %3748 = vmatprep.subr.bf16.mxu1 %v4797_v33 }
 0x65d   : > { %3667 = vmatpush1.bf16.msra.mxu0 %v4792_v34  ;;  %3749 = vmatpush1.bf16.msra.mxu1 %v4795_v35 }
 0x65e   : > { %3668 = vmatprep.subr.bf16.mxu0 %v4800_v36  ;;  %3750 = vmatprep.subr.bf16.mxu1 %v4803_v37 }
 0x661   : > { %3669 = vmatpush1.bf16.msra.mxu0 %v4798_v38  ;;  %3751 = vmatpush1.bf16.msra.mxu1 %v4801_v39 }
 0x662   : > { %3670 = vmatprep.subr.bf16.mxu0 %v4806_v40  ;;  %3752 = vmatprep.subr.bf16.mxu1 %v4809_v41 }
 0x665   : > { %3671 = vmatpush1.bf16.msra.mxu0 %v4804_v42  ;;  %3753 = vmatpush1.bf16.msra.mxu1 %v4807_v43 }
 0x666   : > { %3672 = vmatprep.subr.bf16.mxu0 %v4812_v44  ;;  %3754 = vmatprep.subr.bf16.mxu1 %v4815_v45 }
 0x669   : > { %3673 = vmatpush1.bf16.msra.mxu0 %v4810_v46  ;;  %3755 = vmatpush1.bf16.msra.mxu1 %v4813_v47 }
 0x66a   : > { %3674 = vmatprep.subr.bf16.mxu0 %v4818_v48  ;;  %3756 = vmatprep.subr.bf16.mxu1 %v4821_v49 }
 0x66d   : > { %3675 = vmatpush1.bf16.msra.mxu0 %v4816_v50  ;;  %3757 = vmatpush1.bf16.msra.mxu1 %v4819_v51 }
 0x66e   : > { %3676 = vmatprep.subr.bf16.mxu0 %v4824_v52  ;;  %3758 = vmatprep.subr.bf16.mxu1 %v4827_v2 }
 0x671   : > { %3677 = vmatpush1.bf16.msra.mxu0 %v4822_v53  ;;  %3759 = vmatpush1.bf16.msra.mxu1 %v4825_v55 }
 0x672   : > { %3678 = vmatprep.subr.bf16.mxu0 %v4830_v57  ;;  %3760 = vmatprep.subr.bf16.mxu1 %v4833_v58 }
 0x675   : > { %3679 = vmatpush1.bf16.msra.mxu0 %v4828_v59  ;;  %3761 = vmatpush1.bf16.msra.mxu1 %v4831_v60 }
 0x676   : > { %3680 = vmatprep.subr.bf16.mxu0 %v4836_v61  ;;  %3762 = vmatprep.subr.bf16.mxu1 %v4839_v62 }
 0x679   : > { %3681 = vmatpush1.bf16.msra.mxu0 %v4834_v63  ;;  %3763 = vmatpush1.bf16.msra.mxu1 %v4837_v0 }
 0x67a   : > { %3682 = vmatprep.subr.bf16.mxu0 %v4842_v1  ;;  %3764 = vmatprep.subr.bf16.mxu1 %v4845_v4 }
 0x67d   : > { %3683 = vmatpush1.bf16.msra.mxu0 %v4840_v5  ;;  %3765 = vmatpush1.bf16.msra.mxu1 %v4843_v6 }
 0x67e   : > { %3684 = vmatprep.subr.bf16.mxu0 %v4848_v7  ;;  %3766 = vmatprep.subr.bf16.mxu1 %v4851_v8 }
 0x681   : > { %3685 = vmatpush1.bf16.msra.mxu0 %v4846_v9  ;;  %3767 = vmatpush1.bf16.msra.mxu1 %v4849_v10 }
 0x682   : > { %3686 = vmatprep.subr.bf16.mxu0 %v4854_v12  ;;  %3768 = vmatprep.subr.bf16.mxu1 %v4857_v13 }
 0x685   : > { %3687 = vmatpush1.bf16.msra.mxu0 %v4852_v14  ;;  %3769 = vmatpush1.bf16.msra.mxu1 %v4855_v15 }
 0x687   : > { %v5471_v11 = vpop.f32.mrb[4].mxu1 }
 0x688   : > { %v2818_v16 = vpop.f32.mrb[5].mxu1  ;;  %v2825_v20 = vpack.c.bf16 %v5471_v11, %v5471_v11 }
 0x689   : > { %v2826_v17 = vpack.c.bf16 %v2818_v16, %v2818_v16  ;;  %v2820_v18 = vpop.f32.mrb[6].mxu1  ;;  %v4860_v16 = vld [vmem:[#allocation4 + $0x3e4] ss:$16 sps:$4 sm:$0xff]  }
 0x68a   : > { %v2821_v19 = vpop.f32.mrb[7].mxu1  ;;  %v4858_v18 = vld [vmem:[#allocation4 + $0x3e0] ss:$16 sps:$4 sm:$0xff]   ;;  %3688 = vmatprep.subr.bf16.mxu0 %v4860_v16 }
 0x68b   : > { %3690 = vmatprep.mubr.bf16.mxu0 %v2826_v17  ;;  %3772 = vmatprep.mubr.bf16.mxu1 %v2826_v17  ;;  %v4863_v17 = vld [vmem:[#allocation4 + $0x3ec] ss:$16 sps:$4 sm:$0xff]   ;;  %v4861_v19 = vld [vmem:[#allocation4 + $0x3e8] ss:$16 sps:$4 sm:$0xff]  }
 0x68c   : > { %3770 = vmatprep.subr.bf16.mxu1 %v4863_v17  ;;  %3689 = vmatpush1.bf16.msra.mxu0 %v4858_v18 }
 0x68d   : > { %3771 = vmatpush1.bf16.msra.mxu1 %v4861_v19 }
 0x68f   : > { %3691 = vmatmul.mubr.bf16.vlgmr.msra.gmra.mrb[8].mxu0 %v2825_v20 }
 0x690   : > { %3773 = vmatmul.mubr.bf16.vlgmr.msra.gmra.mrb[8].mxu1 %v2825_v20 }
 0x762   : > { %v3692_v28 = vpop.f32.mrb[8].mxu0 }
 0x763   : > { %v3774_v29 = vpop.f32.mrb[8].mxu1  ;;  %v4286_v30 = vadd.f32 %v3692_v28, %v2960_v22  ;;  %v3694_v31 = vpop.f32.mrb[9].mxu0 }
 0x764   : > { %v4288_v11 = vadd.f32 %v3774_v29, %v2968_v23  ;;  %v3776_v32 = vpop.f32.mrb[9].mxu1  ;;  %v4287_v33 = vadd.f32 %v3694_v31, %v2964_v26  ;;  %v3696_v35 = vpop.f32.mrb[10].mxu0 }
 0x765   : > { %v4289_v34 = vadd.f32 %v3776_v32, %v2972_v27  ;;  %v3778_v36 = vpop.f32.mrb[10].mxu1  ;;  %3781 = vst [vmem:[%s5510_s11] sm:$0xff] %v4286_v30  ;;  %v3697_v54 = vpop.f32.mrb[11].mxu0 }
 0x766   : > { %3783 = vst [vmem:[%s5510_s11 + $0x10] sm:$0xff] %v4288_v11  ;;  %v3779_v3 = vpop.f32.mrb[11].mxu1  ;;  %3782 = vst [vmem:[%s5510_s11 + $0x8] sm:$0xff] %v4287_v33 }
 0x767   : > { %3784 = vst [vmem:[%s5510_s11 + $0x18] sm:$0xff] %v4289_v34 }
 0x768 PF: > { %s22_s17 = sadd.s32 1, %s4902_s17  }
 0x769   : > { %p19_p11 = scmp.ge.s32.totalorder %s22_s17, 6  }
 0x76b   :  { %21 = sbr.rel (!%p19_p11) target bundleno = 1 (0x1), region = 109 }
 0x772   :  { %3796 = vsyncpa [#allocation5], 1 }
 0x773   :  { %3798 = vsyncpa [#allocation5 + $0x1], 1 }

</bundles_post_ra>
